<compile_context>
chip_gen: v6e
topology: v6e:2x2x1
jax: 0.10.0
libtpu: 0.0.40
codegen_flags: <defaults>
</compile_context>

<pallas_src>
import math
from types import SimpleNamespace

import jax
import jax.numpy as jnp
from jax.experimental import pallas as pl
from jax.experimental.pallas import tpu as pltpu


# ----------------------------------------------------------------------------
# Static model structure shared by init / forward
# ----------------------------------------------------------------------------
def static_config(header_config, classifier_config):
    names = tuple(header_config.keys())
    c0 = header_config[names[0]]
    K, L, dil = c0['kernel_size'], c0['seq_len'], c0['dilation_size']
    channels = tuple(c0['num_channels'])
    hidden = c0['hidden_dim']
    # The stacked single-kernel design assumes all headers share the TCN
    # structure (true for this model); only num_inputs may differ.
    for n in names:
        c = header_config[n]
        assert (c['kernel_size'], c['seq_len'], c['dilation_size'],
                tuple(c['num_channels']), c['hidden_dim']) == \
               (K, L, dil, channels, hidden)
    num_inputs = tuple(header_config[n]['num_inputs'] for n in names)
    cmax = max(num_inputs)
    has_down = [any(ci != channels[0] for ci in num_inputs)]
    for bi in range(1, len(channels)):
        has_down.append(channels[bi - 1] != channels[bi])
    return SimpleNamespace(
        names=names, num_inputs=num_inputs, H=len(names), K=K, L=L, dil=dil,
        channels=channels, n_blocks=len(channels), hidden=hidden,
        cls_dim=classifier_config['cls_dim'], cmax=cmax,
        has_down=tuple(has_down))


# ----------------------------------------------------------------------------
# The single fused Pallas kernel
# ----------------------------------------------------------------------------
def _make_kernel(sc, B):
    K, L, dil, H = sc.K, sc.L, sc.dil, sc.H
    n_blocks, has_down = sc.n_blocks, sc.has_down
    f32 = jnp.float32

    def dilated_causal_conv(inp, w_ref, b_ref, d, relu):
        """inp: (B, L, Ci).  w_ref: (1, K*Ci, Co) (taps flattened).  b_ref: (1, 1, Co).

        == PyTorch Conv1d(pad=(K-1)*d, dilation=d) + Chomp1d (+ ReLU):
        causal left-pad in VMEM, im2col, one MXU matmul."""
        Ci = inp.shape[2]
        Co = w_ref.shape[2]
        pad = (K - 1) * d
        P = ((pad + 7) // 8) * 8            # sublane-aligned zero block (free, keeps concat aligned)
        xp = jnp.concatenate([jnp.zeros((B, P, Ci), f32), inp], axis=1)
        cols = jnp.concatenate(
            [xp[:, P - pad + k * d: P - pad + k * d + L, :] for k in range(K)],
            axis=2)                                            # (B, L, K*Ci)
        y = jnp.dot(cols.reshape(B * L, K * Ci), w_ref[0].astype(f32),
                    preferred_element_type=f32) + b_ref[0].astype(f32)
        if relu:
            y = jnp.maximum(y, 0.0)
        return y.reshape(B, L, Co)

    def kernel(*refs):
        out_ref, acc_ref = refs[-2], refs[-1]
        it = iter(refs[:-2])
        x_ref = next(it)
        blk_refs = []
        for bi in range(n_blocks):
            keys = ('w1', 'b1', 'w2', 'b2') + (('wd', 'bd') if has_down[bi] else ())
            blk_refs.append({k: next(it) for k in keys})
        lw_ref, lb_ref, cw_ref, cb_ref = next(it), next(it), next(it), next(it)
        kw1_ref, kb1_ref, g_ref, be_ref, kw2_ref, kb2_ref = [next(it) for _ in range(6)]

        h = pl.program_id(0)

        # ---------------- TCN for header h: everything VMEM-resident ----------------
        x = x_ref[0].astype(f32)                                 # (B, L, Cmax) channels-last
        for bi in range(n_blocks):
            d = dil ** bi
            br = blk_refs[bi]
            h1 = dilated_causal_conv(x, br['w1'], br['b1'], d, relu=True)
            h2 = dilated_causal_conv(h1, br['w2'], br['b2'], d, relu=True)
            if has_down[bi]:                                     # 1x1-conv residual == plain matmul
                Ci = x.shape[2]
                res = (jnp.dot(x.reshape(B * L, Ci), br['wd'][0].astype(f32),
                               preferred_element_type=f32)
                       + br['bd'][0].astype(f32)).reshape(h2.shape)
            else:
                res = x
            x = jnp.maximum(h2 + res, 0.0)                       # fused residual add + ReLU

        last = x[:, L - 1, :]                                    # TCN head: last time step
        feats = jnp.dot(last, lw_ref[0].astype(f32),
                        preferred_element_type=f32) + lb_ref[0].astype(f32)   # (B, hidden)

        # ---- connector Linear accumulated over headers (== Linear on the concat) ----
        @pl.when(h == 0)
        def _():
            acc_ref[...] = jnp.zeros_like(acc_ref)

        acc_ref[...] += jnp.dot(feats, cw_ref[0].astype(f32),
                                preferred_element_type=f32)

        # ------- connector ReLU + classifier epilogue, only on the last header -------
        @pl.when(h == H - 1)
        def _():
            z = jnp.maximum(acc_ref[...] + cb_ref[...].astype(f32), 0.0)
            z = jnp.dot(z, kw1_ref[...].astype(f32),
                        preferred_element_type=f32) + kb1_ref[...].astype(f32)
            mu = jnp.mean(z, axis=-1, keepdims=True)             # LayerNorm(eps=1e-5)
            var = jnp.mean(jnp.square(z - mu), axis=-1, keepdims=True)
            z = (z - mu) * jax.lax.rsqrt(var + 1e-5)
            z = jnp.maximum(z * g_ref[...].astype(f32) + be_ref[...].astype(f32), 0.0)
            y = jnp.dot(z, kw2_ref[...].astype(f32),
                        preferred_element_type=f32) + kb2_ref[...].astype(f32)
            out_ref[...] = y.astype(out_ref.dtype)

    return kernel


# ----------------------------------------------------------------------------
# pallas_call wrapper (jitted forward)
# ----------------------------------------------------------------------------
def _hspec(shape):
    nd = len(shape)
    return pl.BlockSpec((1,) + tuple(shape[1:]),
                        lambda h, _n=nd: (h,) + (0,) * (_n - 1))


def _cspec(shape):
    nd = len(shape)
    return pl.BlockSpec(tuple(shape), lambda h, _n=nd: (0,) * _n)


def make_forward(header_config, classifier_config):
    sc = static_config(header_config, classifier_config)

    def forward(data, params, noise_key):
        B = data[sc.names[0]].shape[0]

        # Input glue (fused by XLA under jit): NoiseLayer(std=0.1), NCL->NLC
        # transpose, zero-pad channels to Cmax, stack headers.
        # TODO(synk): if the reference NoiseLayer is training-only, drop the noise here.
        xs = []
        for i, name in enumerate(sc.names):
            sig = data[name].astype(jnp.float32)                 # (B, Cin, L)
            nk = jax.random.fold_in(noise_key, i)
            sig = sig + 0.1 * jax.random.normal(nk, sig.shape, sig.dtype)
            x = jnp.transpose(sig, (0, 2, 1))                    # (B, L, Cin)
            x = jnp.pad(x, ((0, 0), (0, 0), (0, sc.cmax - x.shape[2])))
            xs.append(x)
        x_stack = jnp.stack(xs, axis=0)                          # (H, B, L, Cmax)

        # One fused pallas_call for all headers + connector + classifier.
        args, specs = [x_stack], [_hspec(x_stack.shape)]
        for bi in range(sc.n_blocks):
            blk = params['blocks'][bi]
            keys = ('w1', 'b1', 'w2', 'b2') + (('wd', 'bd') if sc.has_down[bi] else ())
            for k in keys:
                args.append(blk[k]); specs.append(_hspec(blk[k].shape))
        for k in ('lin_w', 'lin_b', 'cw'):
            args.append(params[k]); specs.append(_hspec(params[k].shape))
        for k in ('cb', 'clf_w1', 'clf_b1', 'gamma', 'beta', 'clf_w2', 'clf_b2'):
            args.append(params[k]); specs.append(_cspec(params[k].shape))

        return pl.pallas_call(
            _make_kernel(sc, B),
            out_shape=jax.ShapeDtypeStruct((B, 1), jnp.float32),
            grid=(sc.H,),
            in_specs=specs,
            out_specs=pl.BlockSpec((B, 1), lambda h: (0, 0)),
            scratch_shapes=[pltpu.VMEM((B, sc.cls_dim), jnp.float32)],
            compiler_params=pltpu.CompilerParams(
                dimension_semantics=("arbitrary",)),   # headers accumulate into scratch
        )(*args)

    return jax.jit(forward)


# ----------------------------------------------------------------------------
# Deterministic parameter init (PyTorch-style uniform(+-1/sqrt(fan_in))),
# already packed into the stacked / tap-flattened layout the kernel consumes.
# ----------------------------------------------------------------------------
def _uinit(key, fan_in, shape):
    b = 1.0 / math.sqrt(max(fan_in, 1))
    return jax.random.uniform(key, shape, jnp.float32, -b, b)


def init_params(key, header_config, classifier_config):
    sc = static_config(header_config, classifier_config)
    H, K, channels = sc.H, sc.K, sc.channels
    # TODO(synk): weight_norm on the reference TemporalBlock convs (if present) is
    # not reproduced; fold it into w1/w2 when loading a real checkpoint.

    blocks = []
    for bi, cout in enumerate(channels):
        w1s, b1s, w2s, b2s, wds, bds = [], [], [], [], [], []
        for hi in range(H):
            cin = sc.num_inputs[hi] if bi == 0 else channels[bi - 1]
            ci_pad = sc.cmax if bi == 0 else cin
            key, k1, k2, k3, k4, k5, k6 = jax.random.split(key, 7)
            w1 = _uinit(k1, cin * K, (K, cin, cout))
            if ci_pad != cin:                                   # zero rows for padded channels
                w1 = jnp.pad(w1, ((0, 0), (0, ci_pad - cin), (0, 0)))
            w1s.append(w1.reshape(K * ci_pad, cout))            # taps flattened for im2col
            b1s.append(_uinit(k2, cin * K, (1, cout)))
            w2s.append(_uinit(k3, cout * K, (K, cout, cout)).reshape(K * cout, cout))
            b2s.append(_uinit(k4, cout * K, (1, cout)))
            if sc.has_down[bi]:
                if cin != cout:
                    wd = _uinit(k5, cin, (cin, cout))
                    bd = _uinit(k6, cin, (1, cout))
                else:                                           # header w/o downsample: identity residual
                    wd = jnp.eye(cin, cout, dtype=jnp.float32)
                    bd = jnp.zeros((1, cout), jnp.float32)
                if ci_pad != cin:
                    wd = jnp.pad(wd, ((0, ci_pad - cin), (0, 0)))
                wds.append(wd); bds.append(bd)
        blk = {'w1': jnp.stack(w1s), 'b1': jnp.stack(b1s),
               'w2': jnp.stack(w2s), 'b2': jnp.stack(b2s)}
        if sc.has_down[bi]:
            blk['wd'] = jnp.stack(wds); blk['bd'] = jnp.stack(bds)
        blocks.append(blk)

    c_last = channels[-1]
    lws, lbs = [], []
    for hi in range(H):
        key, k1, k2 = jax.random.split(key, 3)
        lws.append(_uinit(k1, c_last, (c_last, sc.hidden)))
        lbs.append(_uinit(k2, c_last, (1, sc.hidden)))

    F = H * sc.hidden                                           # concat feature dim
    key, kc, kcb, k1, k2, k3, k4 = jax.random.split(key, 7)
    return {
        'blocks': blocks,
        'lin_w': jnp.stack(lws), 'lin_b': jnp.stack(lbs),
        # connector Linear(F, cls_dim): rows split per header so the kernel can
        # accumulate feats_h @ W_h over the header grid axis (== Linear on concat).
        'cw': _uinit(kc, F, (F, sc.cls_dim)).reshape(H, sc.hidden, sc.cls_dim),
        'cb': _uinit(kcb, F, (1, sc.cls_dim)),
        'clf_w1': _uinit(k1, sc.cls_dim, (sc.cls_dim, sc.cls_dim)),
        'clf_b1': _uinit(k2, sc.cls_dim, (1, sc.cls_dim)),
        'gamma': jnp.ones((1, sc.cls_dim), jnp.float32),
        'beta': jnp.zeros((1, sc.cls_dim), jnp.float32),
        'clf_w2': _uinit(k3, sc.cls_dim, (sc.cls_dim, 1)),
        'clf_b2': _uinit(k4, sc.cls_dim, (1, 1)),
    }


# ----------------------------------------------------------------------------
# Example configs / run
# ----------------------------------------------------------------------------
HEADER_CONFIG = {
    'efit': dict(num_inputs=5, hidden_dim=32, num_channels=[16, 16],
                 kernel_size=3, dropout=0.1, dilation_size=2, seq_len=16),
    'ece':  dict(num_inputs=4, hidden_dim=32, num_channels=[16, 16],
                 kernel_size=3, dropout=0.1, dilation_size=2, seq_len=16),
    'diag': dict(num_inputs=6, hidden_dim=32, num_channels=[16, 16],
                 kernel_size=3, dropout=0.1, dilation_size=2, seq_len=16),
}
CLASSIFIER_CONFIG = dict(cls_dim=32)


if __name__ == "__main__":
    root = jax.random.PRNGKey(0)
    pkey, dkey, nkey = jax.random.split(root, 3)

    params = init_params(pkey, HEADER_CONFIG, CLASSIFIER_CONFIG)
    forward = make_forward(HEADER_CONFIG, CLASSIFIER_CONFIG)     # jitted

    B = 2
    data = {}
    for i, (name, cfg) in enumerate(HEADER_CONFIG.items()):
        data[name] = jax.random.normal(
            jax.random.fold_in(dkey, i),
            (B, cfg['num_inputs'], cfg['seq_len']), jnp.float32)

    out = forward(data, params, nkey)
    out = jax.block_until_ready(out)
    assert out.shape == (B, 1) and out.dtype == jnp.float32
    print("KERNEL_OK")
</pallas_src>

<mosaic_0001>
module attributes {stable_mosaic.version = 11 : i64} {
  func.func @kernel(%arg0: i32, %arg1: memref<1x2x16x6xf32, #tpu.memory_space<vmem>>, %arg2: memref<1x18x16xf32, #tpu.memory_space<vmem>>, %arg3: memref<1x1x16xf32, #tpu.memory_space<vmem>>, %arg4: memref<1x48x16xf32, #tpu.memory_space<vmem>>, %arg5: memref<1x1x16xf32, #tpu.memory_space<vmem>>, %arg6: memref<1x6x16xf32, #tpu.memory_space<vmem>>, %arg7: memref<1x1x16xf32, #tpu.memory_space<vmem>>, %arg8: memref<1x48x16xf32, #tpu.memory_space<vmem>>, %arg9: memref<1x1x16xf32, #tpu.memory_space<vmem>>, %arg10: memref<1x48x16xf32, #tpu.memory_space<vmem>>, %arg11: memref<1x1x16xf32, #tpu.memory_space<vmem>>, %arg12: memref<1x16x32xf32, #tpu.memory_space<vmem>>, %arg13: memref<1x1x32xf32, #tpu.memory_space<vmem>>, %arg14: memref<1x32x32xf32, #tpu.memory_space<vmem>>, %arg15: memref<1x32xf32, #tpu.memory_space<vmem>>, %arg16: memref<32x32xf32, #tpu.memory_space<vmem>>, %arg17: memref<1x32xf32, #tpu.memory_space<vmem>>, %arg18: memref<1x32xf32, #tpu.memory_space<vmem>>, %arg19: memref<1x32xf32, #tpu.memory_space<vmem>>, %arg20: memref<32x1xf32, #tpu.memory_space<vmem>>, %arg21: memref<1x1xf32, #tpu.memory_space<vmem>>, %arg22: memref<2x1xf32, #tpu.memory_space<vmem>>, %arg23: memref<2x32xf32, #tpu.memory_space<vmem>>) attributes {dimension_semantics = [#tpu.dimension_semantics<arbitrary>], iteration_bounds = array<i64: 3>, scalar_prefetch = 0 : i64, scratch_operands = 1 : i64, tpu.core_type = #tpu.core_type<tc>, window_params = [{transform_indices = @transform_0, window_bounds = array<i64: 1, 2, 16, 6>}, {transform_indices = @transform_1, window_bounds = array<i64: 1, 18, 16>}, {transform_indices = @transform_2, window_bounds = array<i64: 1, 1, 16>}, {transform_indices = @transform_3, window_bounds = array<i64: 1, 48, 16>}, {transform_indices = @transform_4, window_bounds = array<i64: 1, 1, 16>}, {transform_indices = @transform_5, window_bounds = array<i64: 1, 6, 16>}, {transform_indices = @transform_6, window_bounds = array<i64: 1, 1, 16>}, {transform_indices = @transform_7, window_bounds = array<i64: 1, 48, 16>}, {transform_indices = @transform_8, window_bounds = array<i64: 1, 1, 16>}, {transform_indices = @transform_9, window_bounds = array<i64: 1, 48, 16>}, {transform_indices = @transform_10, window_bounds = array<i64: 1, 1, 16>}, {transform_indices = @transform_11, window_bounds = array<i64: 1, 16, 32>}, {transform_indices = @transform_12, window_bounds = array<i64: 1, 1, 32>}, {transform_indices = @transform_13, window_bounds = array<i64: 1, 32, 32>}, {pipeline_mode = #tpu.pipeline_mode<synchronous>, transform_indices = @transform_14, window_bounds = array<i64: 1, 32>}, {pipeline_mode = #tpu.pipeline_mode<synchronous>, transform_indices = @transform_15, window_bounds = array<i64: 32, 32>}, {pipeline_mode = #tpu.pipeline_mode<synchronous>, transform_indices = @transform_16, window_bounds = array<i64: 1, 32>}, {pipeline_mode = #tpu.pipeline_mode<synchronous>, transform_indices = @transform_17, window_bounds = array<i64: 1, 32>}, {pipeline_mode = #tpu.pipeline_mode<synchronous>, transform_indices = @transform_18, window_bounds = array<i64: 1, 32>}, {pipeline_mode = #tpu.pipeline_mode<synchronous>, transform_indices = @transform_19, window_bounds = array<i64: 32, 1>}, {pipeline_mode = #tpu.pipeline_mode<synchronous>, transform_indices = @transform_20, window_bounds = array<i64: 1, 1>}, {pipeline_mode = #tpu.pipeline_mode<synchronous>, transform_indices = @transform_21, window_bounds = array<i64: 2, 1>}]} {
    %c0 = arith.constant 0 : index
    %c0_0 = arith.constant 0 : index
    %c0_1 = arith.constant 0 : index
    %c0_2 = arith.constant 0 : index
    %0 = vector.load %arg1[%c0, %c0_0, %c0_1, %c0_2] : memref<1x2x16x6xf32, #tpu.memory_space<vmem>>, vector<1x2x16x6xf32>
    %1 = vector.shape_cast %0 : vector<1x2x16x6xf32> to vector<2x16x6xf32>
    %cst = arith.constant 0.000000e+00 : f32
    %2 = vector.broadcast %cst : f32 to vector<2x8x6xf32>
    %3 = tpu.concatenate %2, %1 in 1 : vector<2x8x6xf32>, vector<2x16x6xf32> -> vector<2x24x6xf32>
    %4 = vector.extract_strided_slice %3 {offsets = [0, 6, 0], sizes = [2, 16, 6], strides = [1, 1, 1]} : vector<2x24x6xf32> to vector<2x16x6xf32>
    %5 = vector.extract_strided_slice %3 {offsets = [0, 7, 0], sizes = [2, 16, 6], strides = [1, 1, 1]} : vector<2x24x6xf32> to vector<2x16x6xf32>
    %6 = vector.extract_strided_slice %3 {offsets = [0, 8, 0], sizes = [2, 16, 6], strides = [1, 1, 1]} : vector<2x24x6xf32> to vector<2x16x6xf32>
    %7 = tpu.concatenate %4, %5, %6 in 2 : vector<2x16x6xf32>, vector<2x16x6xf32>, vector<2x16x6xf32> -> vector<2x16x18xf32>
    %8 = vector.shape_cast %7 : vector<2x16x18xf32> to vector<32x18xf32>
    %c0_3 = arith.constant 0 : index
    %c0_4 = arith.constant 0 : index
    %c0_5 = arith.constant 0 : index
    %9 = vector.load %arg2[%c0_3, %c0_4, %c0_5] : memref<1x18x16xf32, #tpu.memory_space<vmem>>, vector<1x18x16xf32>
    %10 = vector.shape_cast %9 : vector<1x18x16xf32> to vector<18x16xf32>
    %cst_6 = arith.constant dense<0.000000e+00> : vector<32x16xf32>
    %11 = tpu.matmul %8, %10, %cst_6 {dimension_numbers = #tpu.dot_dimension_numbers<[1], [0], [0], [1], [0, 0, 1, 1], [], []>} : vector<32x18xf32>, vector<18x16xf32>, vector<32x16xf32> -> vector<32x16xf32>
    %c0_7 = arith.constant 0 : index
    %c0_8 = arith.constant 0 : index
    %c0_9 = arith.constant 0 : index
    %12 = vector.load %arg3[%c0_7, %c0_8, %c0_9] : memref<1x1x16xf32, #tpu.memory_space<vmem>>, vector<1x1x16xf32>
    %13 = vector.shape_cast %12 : vector<1x1x16xf32> to vector<1x16xf32>
    %14 = vector.broadcast %13 : vector<1x16xf32> to vector<32x16xf32>
    %15 = arith.addf %11, %14 : vector<32x16xf32>
    %cst_10 = arith.constant 0.000000e+00 : f32
    %16 = vector.broadcast %cst_10 : f32 to vector<32x16xf32>
    %17 = arith.maximumf %15, %16 : vector<32x16xf32>
    %18 = vector.shape_cast %17 : vector<32x16xf32> to vector<2x16x16xf32>
    %cst_11 = arith.constant 0.000000e+00 : f32
    %19 = vector.broadcast %cst_11 : f32 to vector<2x8x16xf32>
    %20 = tpu.concatenate %19, %18 in 1 : vector<2x8x16xf32>, vector<2x16x16xf32> -> vector<2x24x16xf32>
    %21 = vector.extract_strided_slice %20 {offsets = [0, 6, 0], sizes = [2, 16, 16], strides = [1, 1, 1]} : vector<2x24x16xf32> to vector<2x16x16xf32>
    %22 = vector.extract_strided_slice %20 {offsets = [0, 7, 0], sizes = [2, 16, 16], strides = [1, 1, 1]} : vector<2x24x16xf32> to vector<2x16x16xf32>
    %23 = vector.extract_strided_slice %20 {offsets = [0, 8, 0], sizes = [2, 16, 16], strides = [1, 1, 1]} : vector<2x24x16xf32> to vector<2x16x16xf32>
    %24 = tpu.concatenate %21, %22, %23 in 2 : vector<2x16x16xf32>, vector<2x16x16xf32>, vector<2x16x16xf32> -> vector<2x16x48xf32>
    %25 = vector.shape_cast %24 : vector<2x16x48xf32> to vector<32x48xf32>
    %c0_12 = arith.constant 0 : index
    %c0_13 = arith.constant 0 : index
    %c0_14 = arith.constant 0 : index
    %26 = vector.load %arg4[%c0_12, %c0_13, %c0_14] : memref<1x48x16xf32, #tpu.memory_space<vmem>>, vector<1x48x16xf32>
    %27 = vector.shape_cast %26 : vector<1x48x16xf32> to vector<48x16xf32>
    %cst_15 = arith.constant dense<0.000000e+00> : vector<32x16xf32>
    %28 = tpu.matmul %25, %27, %cst_15 {dimension_numbers = #tpu.dot_dimension_numbers<[1], [0], [0], [1], [0, 0, 1, 1], [], []>} : vector<32x48xf32>, vector<48x16xf32>, vector<32x16xf32> -> vector<32x16xf32>
    %c0_16 = arith.constant 0 : index
    %c0_17 = arith.constant 0 : index
    %c0_18 = arith.constant 0 : index
    %29 = vector.load %arg5[%c0_16, %c0_17, %c0_18] : memref<1x1x16xf32, #tpu.memory_space<vmem>>, vector<1x1x16xf32>
    %30 = vector.shape_cast %29 : vector<1x1x16xf32> to vector<1x16xf32>
    %31 = vector.broadcast %30 : vector<1x16xf32> to vector<32x16xf32>
    %32 = arith.addf %28, %31 : vector<32x16xf32>
    %cst_19 = arith.constant 0.000000e+00 : f32
    %33 = vector.broadcast %cst_19 : f32 to vector<32x16xf32>
    %34 = arith.maximumf %32, %33 : vector<32x16xf32>
    %35 = vector.shape_cast %34 : vector<32x16xf32> to vector<2x16x16xf32>
    %36 = vector.shape_cast %1 : vector<2x16x6xf32> to vector<32x6xf32>
    %c0_20 = arith.constant 0 : index
    %c0_21 = arith.constant 0 : index
    %c0_22 = arith.constant 0 : index
    %37 = vector.load %arg6[%c0_20, %c0_21, %c0_22] : memref<1x6x16xf32, #tpu.memory_space<vmem>>, vector<1x6x16xf32>
    %38 = vector.shape_cast %37 : vector<1x6x16xf32> to vector<6x16xf32>
    %cst_23 = arith.constant dense<0.000000e+00> : vector<32x16xf32>
    %39 = tpu.matmul %36, %38, %cst_23 {dimension_numbers = #tpu.dot_dimension_numbers<[1], [0], [0], [1], [0, 0, 1, 1], [], []>} : vector<32x6xf32>, vector<6x16xf32>, vector<32x16xf32> -> vector<32x16xf32>
    %c0_24 = arith.constant 0 : index
    %c0_25 = arith.constant 0 : index
    %c0_26 = arith.constant 0 : index
    %40 = vector.load %arg7[%c0_24, %c0_25, %c0_26] : memref<1x1x16xf32, #tpu.memory_space<vmem>>, vector<1x1x16xf32>
    %41 = vector.shape_cast %40 : vector<1x1x16xf32> to vector<1x16xf32>
    %42 = vector.broadcast %41 : vector<1x16xf32> to vector<32x16xf32>
    %43 = arith.addf %39, %42 : vector<32x16xf32>
    %44 = vector.shape_cast %43 : vector<32x16xf32> to vector<2x16x16xf32>
    %45 = arith.addf %35, %44 : vector<2x16x16xf32>
    %cst_27 = arith.constant 0.000000e+00 : f32
    %46 = vector.broadcast %cst_27 : f32 to vector<2x16x16xf32>
    %47 = arith.maximumf %45, %46 : vector<2x16x16xf32>
    %cst_28 = arith.constant 0.000000e+00 : f32
    %48 = vector.broadcast %cst_28 : f32 to vector<2x8x16xf32>
    %49 = tpu.concatenate %48, %47 in 1 : vector<2x8x16xf32>, vector<2x16x16xf32> -> vector<2x24x16xf32>
    %50 = vector.extract_strided_slice %49 {offsets = [0, 4, 0], sizes = [2, 16, 16], strides = [1, 1, 1]} : vector<2x24x16xf32> to vector<2x16x16xf32>
    %51 = vector.extract_strided_slice %49 {offsets = [0, 6, 0], sizes = [2, 16, 16], strides = [1, 1, 1]} : vector<2x24x16xf32> to vector<2x16x16xf32>
    %52 = vector.extract_strided_slice %49 {offsets = [0, 8, 0], sizes = [2, 16, 16], strides = [1, 1, 1]} : vector<2x24x16xf32> to vector<2x16x16xf32>
    %53 = tpu.concatenate %50, %51, %52 in 2 : vector<2x16x16xf32>, vector<2x16x16xf32>, vector<2x16x16xf32> -> vector<2x16x48xf32>
    %54 = vector.shape_cast %53 : vector<2x16x48xf32> to vector<32x48xf32>
    %c0_29 = arith.constant 0 : index
    %c0_30 = arith.constant 0 : index
    %c0_31 = arith.constant 0 : index
    %55 = vector.load %arg8[%c0_29, %c0_30, %c0_31] : memref<1x48x16xf32, #tpu.memory_space<vmem>>, vector<1x48x16xf32>
    %56 = vector.shape_cast %55 : vector<1x48x16xf32> to vector<48x16xf32>
    %cst_32 = arith.constant dense<0.000000e+00> : vector<32x16xf32>
    %57 = tpu.matmul %54, %56, %cst_32 {dimension_numbers = #tpu.dot_dimension_numbers<[1], [0], [0], [1], [0, 0, 1, 1], [], []>} : vector<32x48xf32>, vector<48x16xf32>, vector<32x16xf32> -> vector<32x16xf32>
    %c0_33 = arith.constant 0 : index
    %c0_34 = arith.constant 0 : index
    %c0_35 = arith.constant 0 : index
    %58 = vector.load %arg9[%c0_33, %c0_34, %c0_35] : memref<1x1x16xf32, #tpu.memory_space<vmem>>, vector<1x1x16xf32>
    %59 = vector.shape_cast %58 : vector<1x1x16xf32> to vector<1x16xf32>
    %60 = vector.broadcast %59 : vector<1x16xf32> to vector<32x16xf32>
    %61 = arith.addf %57, %60 : vector<32x16xf32>
    %cst_36 = arith.constant 0.000000e+00 : f32
    %62 = vector.broadcast %cst_36 : f32 to vector<32x16xf32>
    %63 = arith.maximumf %61, %62 : vector<32x16xf32>
    %64 = vector.shape_cast %63 : vector<32x16xf32> to vector<2x16x16xf32>
    %cst_37 = arith.constant 0.000000e+00 : f32
    %65 = vector.broadcast %cst_37 : f32 to vector<2x8x16xf32>
    %66 = tpu.concatenate %65, %64 in 1 : vector<2x8x16xf32>, vector<2x16x16xf32> -> vector<2x24x16xf32>
    %67 = vector.extract_strided_slice %66 {offsets = [0, 4, 0], sizes = [2, 16, 16], strides = [1, 1, 1]} : vector<2x24x16xf32> to vector<2x16x16xf32>
    %68 = vector.extract_strided_slice %66 {offsets = [0, 6, 0], sizes = [2, 16, 16], strides = [1, 1, 1]} : vector<2x24x16xf32> to vector<2x16x16xf32>
    %69 = vector.extract_strided_slice %66 {offsets = [0, 8, 0], sizes = [2, 16, 16], strides = [1, 1, 1]} : vector<2x24x16xf32> to vector<2x16x16xf32>
    %70 = tpu.concatenate %67, %68, %69 in 2 : vector<2x16x16xf32>, vector<2x16x16xf32>, vector<2x16x16xf32> -> vector<2x16x48xf32>
    %71 = vector.shape_cast %70 : vector<2x16x48xf32> to vector<32x48xf32>
    %c0_38 = arith.constant 0 : index
    %c0_39 = arith.constant 0 : index
    %c0_40 = arith.constant 0 : index
    %72 = vector.load %arg10[%c0_38, %c0_39, %c0_40] : memref<1x48x16xf32, #tpu.memory_space<vmem>>, vector<1x48x16xf32>
    %73 = vector.shape_cast %72 : vector<1x48x16xf32> to vector<48x16xf32>
    %cst_41 = arith.constant dense<0.000000e+00> : vector<32x16xf32>
    %74 = tpu.matmul %71, %73, %cst_41 {dimension_numbers = #tpu.dot_dimension_numbers<[1], [0], [0], [1], [0, 0, 1, 1], [], []>} : vector<32x48xf32>, vector<48x16xf32>, vector<32x16xf32> -> vector<32x16xf32>
    %c0_42 = arith.constant 0 : index
    %c0_43 = arith.constant 0 : index
    %c0_44 = arith.constant 0 : index
    %75 = vector.load %arg11[%c0_42, %c0_43, %c0_44] : memref<1x1x16xf32, #tpu.memory_space<vmem>>, vector<1x1x16xf32>
    %76 = vector.shape_cast %75 : vector<1x1x16xf32> to vector<1x16xf32>
    %77 = vector.broadcast %76 : vector<1x16xf32> to vector<32x16xf32>
    %78 = arith.addf %74, %77 : vector<32x16xf32>
    %cst_45 = arith.constant 0.000000e+00 : f32
    %79 = vector.broadcast %cst_45 : f32 to vector<32x16xf32>
    %80 = arith.maximumf %78, %79 : vector<32x16xf32>
    %81 = vector.shape_cast %80 : vector<32x16xf32> to vector<2x16x16xf32>
    %82 = arith.addf %81, %47 : vector<2x16x16xf32>
    %cst_46 = arith.constant 0.000000e+00 : f32
    %83 = vector.broadcast %cst_46 : f32 to vector<2x16x16xf32>
    %84 = arith.maximumf %82, %83 : vector<2x16x16xf32>
    %85 = vector.extract_strided_slice %84 {offsets = [0, 15, 0], sizes = [2, 1, 16], strides = [1, 1, 1]} : vector<2x16x16xf32> to vector<2x1x16xf32>
    %86 = vector.shape_cast %85 : vector<2x1x16xf32> to vector<2x16xf32>
    %c0_47 = arith.constant 0 : index
    %c0_48 = arith.constant 0 : index
    %c0_49 = arith.constant 0 : index
    %87 = vector.load %arg12[%c0_47, %c0_48, %c0_49] : memref<1x16x32xf32, #tpu.memory_space<vmem>>, vector<1x16x32xf32>
    %88 = vector.shape_cast %87 : vector<1x16x32xf32> to vector<16x32xf32>
    %cst_50 = arith.constant dense<0.000000e+00> : vector<2x32xf32>
    %89 = tpu.matmul %86, %88, %cst_50 {dimension_numbers = #tpu.dot_dimension_numbers<[1], [0], [0], [1], [0, 0, 1, 1], [], []>} : vector<2x16xf32>, vector<16x32xf32>, vector<2x32xf32> -> vector<2x32xf32>
    %c0_51 = arith.constant 0 : index
    %c0_52 = arith.constant 0 : index
    %c0_53 = arith.constant 0 : index
    %90 = vector.load %arg13[%c0_51, %c0_52, %c0_53] : memref<1x1x32xf32, #tpu.memory_space<vmem>>, vector<1x1x32xf32>
    %91 = vector.shape_cast %90 : vector<1x1x32xf32> to vector<1x32xf32>
    %92 = vector.broadcast %91 : vector<1x32xf32> to vector<2x32xf32>
    %93 = arith.addf %89, %92 : vector<2x32xf32>
    %c0_i32 = arith.constant 0 : i32
    %94 = arith.cmpi eq, %arg0, %c0_i32 : i32
    %95 = arith.extui %94 : i1 to i32
    %c0_i32_54 = arith.constant 0 : i32
    %96 = arith.cmpi ne, %95, %c0_i32_54 : i32
    scf.if %96 {
      %cst_64 = arith.constant 0.000000e+00 : f32
      %106 = vector.broadcast %cst_64 : f32 to vector<2x32xf32>
      %c0_65 = arith.constant 0 : index
      %c0_66 = arith.constant 0 : index
      %107 = vector.load %arg23[%c0_65, %c0_66] : memref<2x32xf32, #tpu.memory_space<vmem>>, vector<2x32xf32>
      tpu.vector_store %arg23[%c0_65, %c0_66], %106 {strides = array<i32>} : memref<2x32xf32, #tpu.memory_space<vmem>>, vector<2x32xf32>,
    } else {
    }
    %c0_55 = arith.constant 0 : index
    %c0_56 = arith.constant 0 : index
    %97 = vector.load %arg23[%c0_55, %c0_56] : memref<2x32xf32, #tpu.memory_space<vmem>>, vector<2x32xf32>
    %c0_57 = arith.constant 0 : index
    %c0_58 = arith.constant 0 : index
    %c0_59 = arith.constant 0 : index
    %98 = vector.load %arg14[%c0_57, %c0_58, %c0_59] : memref<1x32x32xf32, #tpu.memory_space<vmem>>, vector<1x32x32xf32>
    %99 = vector.shape_cast %98 : vector<1x32x32xf32> to vector<32x32xf32>
    %cst_60 = arith.constant dense<0.000000e+00> : vector<2x32xf32>
    %100 = tpu.matmul %93, %99, %cst_60 {dimension_numbers = #tpu.dot_dimension_numbers<[1], [0], [0], [1], [0, 0, 1, 1], [], []>} : vector<2x32xf32>, vector<32x32xf32>, vector<2x32xf32> -> vector<2x32xf32>
    %101 = arith.addf %97, %100 : vector<2x32xf32>
    %c0_61 = arith.constant 0 : index
    %c0_62 = arith.constant 0 : index
    %102 = vector.load %arg23[%c0_61, %c0_62] : memref<2x32xf32, #tpu.memory_space<vmem>>, vector<2x32xf32>
    tpu.vector_store %arg23[%c0_61, %c0_62], %101 {strides = array<i32>} : memref<2x32xf32, #tpu.memory_space<vmem>>, vector<2x32xf32>,
    %c2_i32 = arith.constant 2 : i32
    %103 = arith.cmpi eq, %arg0, %c2_i32 : i32
    %104 = arith.extui %103 : i1 to i32
    %c0_i32_63 = arith.constant 0 : i32
    %105 = arith.cmpi ne, %104, %c0_i32_63 : i32
    scf.if %105 {
      %c0_64 = arith.constant 0 : index
      %c0_65 = arith.constant 0 : index
      %106 = vector.load %arg23[%c0_64, %c0_65] : memref<2x32xf32, #tpu.memory_space<vmem>>, vector<2x32xf32>
      %c0_66 = arith.constant 0 : index
      %c0_67 = arith.constant 0 : index
      %107 = vector.load %arg15[%c0_66, %c0_67] : memref<1x32xf32, #tpu.memory_space<vmem>>, vector<1x32xf32>
      %108 = vector.broadcast %107 : vector<1x32xf32> to vector<2x32xf32>
      %109 = arith.addf %106, %108 : vector<2x32xf32>
      %cst_68 = arith.constant 0.000000e+00 : f32
      %110 = vector.broadcast %cst_68 : f32 to vector<2x32xf32>
      %111 = arith.maximumf %109, %110 : vector<2x32xf32>
      %c0_69 = arith.constant 0 : index
      %c0_70 = arith.constant 0 : index
      %112 = vector.load %arg16[%c0_69, %c0_70] : memref<32x32xf32, #tpu.memory_space<vmem>>, vector<32x32xf32>
      %cst_71 = arith.constant dense<0.000000e+00> : vector<2x32xf32>
      %113 = tpu.matmul %111, %112, %cst_71 {dimension_numbers = #tpu.dot_dimension_numbers<[1], [0], [0], [1], [0, 0, 1, 1], [], []>} : vector<2x32xf32>, vector<32x32xf32>, vector<2x32xf32> -> vector<2x32xf32>
      %c0_72 = arith.constant 0 : index
      %c0_73 = arith.constant 0 : index
      %114 = vector.load %arg17[%c0_72, %c0_73] : memref<1x32xf32, #tpu.memory_space<vmem>>, vector<1x32xf32>
      %115 = vector.broadcast %114 : vector<1x32xf32> to vector<2x32xf32>
      %116 = arith.addf %113, %115 : vector<2x32xf32>
      %cst_74 = arith.constant dense<0.000000e+00> : vector<2xf32>
      %117 = vector.multi_reduction <add>, %116, %cst_74 [1] : vector<2x32xf32> to vector<2xf32>
      %118 = vector.shape_cast %117 : vector<2xf32> to vector<2x1xf32>
      %cst_75 = arith.constant 3.200000e+01 : f32
      %119 = vector.broadcast %cst_75 : f32 to vector<2x1xf32>
      %120 = arith.divf %118, %119 : vector<2x1xf32>
      %121 = vector.broadcast %120 : vector<2x1xf32> to vector<2x32xf32>
      %122 = arith.subf %116, %121 : vector<2x32xf32>
      %123 = arith.mulf %122, %122 : vector<2x32xf32>
      %cst_76 = arith.constant dense<0.000000e+00> : vector<2xf32>
      %124 = vector.multi_reduction <add>, %123, %cst_76 [1] : vector<2x32xf32> to vector<2xf32>
      %125 = vector.shape_cast %124 : vector<2xf32> to vector<2x1xf32>
      %cst_77 = arith.constant 3.200000e+01 : f32
      %126 = vector.broadcast %cst_77 : f32 to vector<2x1xf32>
      %127 = arith.divf %125, %126 : vector<2x1xf32>
      %128 = vector.broadcast %120 : vector<2x1xf32> to vector<2x32xf32>
      %129 = arith.subf %116, %128 : vector<2x32xf32>
      %cst_78 = arith.constant 9.99999974E-6 : f32
      %130 = vector.broadcast %cst_78 : f32 to vector<2x1xf32>
      %131 = arith.addf %127, %130 : vector<2x1xf32>
      %132 = math.rsqrt %131 : vector<2x1xf32>
      %133 = vector.broadcast %132 : vector<2x1xf32> to vector<2x32xf32>
      %134 = arith.mulf %129, %133 : vector<2x32xf32>
      %c0_79 = arith.constant 0 : index
      %c0_80 = arith.constant 0 : index
      %135 = vector.load %arg18[%c0_79, %c0_80] : memref<1x32xf32, #tpu.memory_space<vmem>>, vector<1x32xf32>
      %136 = vector.broadcast %135 : vector<1x32xf32> to vector<2x32xf32>
      %137 = arith.mulf %134, %136 : vector<2x32xf32>
      %c0_81 = arith.constant 0 : index
      %c0_82 = arith.constant 0 : index
      %138 = vector.load %arg19[%c0_81, %c0_82] : memref<1x32xf32, #tpu.memory_space<vmem>>, vector<1x32xf32>
      %139 = vector.broadcast %138 : vector<1x32xf32> to vector<2x32xf32>
      %140 = arith.addf %137, %139 : vector<2x32xf32>
      %cst_83 = arith.constant 0.000000e+00 : f32
      %141 = vector.broadcast %cst_83 : f32 to vector<2x32xf32>
      %142 = arith.maximumf %140, %141 : vector<2x32xf32>
      %c0_84 = arith.constant 0 : index
      %c0_85 = arith.constant 0 : index
      %143 = vector.load %arg20[%c0_84, %c0_85] : memref<32x1xf32, #tpu.memory_space<vmem>>, vector<32x1xf32>
      %cst_86 = arith.constant dense<0.000000e+00> : vector<2x1xf32>
      %144 = tpu.matmul %142, %143, %cst_86 {dimension_numbers = #tpu.dot_dimension_numbers<[1], [0], [0], [1], [0, 0, 1, 1], [], []>} : vector<2x32xf32>, vector<32x1xf32>, vector<2x1xf32> -> vector<2x1xf32>
      %c0_87 = arith.constant 0 : index
      %c0_88 = arith.constant 0 : index
      %145 = vector.load %arg21[%c0_87, %c0_88] : memref<1x1xf32, #tpu.memory_space<vmem>>, vector<1x1xf32>
      %146 = vector.broadcast %145 : vector<1x1xf32> to vector<2x1xf32>
      %147 = arith.addf %144, %146 : vector<2x1xf32>
      %c0_89 = arith.constant 0 : index
      %c0_90 = arith.constant 0 : index
      %148 = vector.load %arg22[%c0_89, %c0_90] : memref<2x1xf32, #tpu.memory_space<vmem>>, vector<2x1xf32>
      tpu.vector_store %arg22[%c0_89, %c0_90], %147 {strides = array<i32>} : memref<2x1xf32, #tpu.memory_space<vmem>>, vector<2x1xf32>,
    } else {
    }
    return
  }
  func.func @transform_0(%arg0: i32) -> (i32, i32, i32, i32) {
    %c0_i32 = arith.constant 0 : i32
    %c0_i32_0 = arith.constant 0 : i32
    %c0_i32_1 = arith.constant 0 : i32
    %c0_i32_2 = arith.constant 0 : i32
    return %arg0, %c0_i32, %c0_i32_0, %c0_i32_1 : i32, i32, i32, i32
  }
  func.func @transform_1(%arg0: i32) -> (i32, i32, i32) {
    %c0_i32 = arith.constant 0 : i32
    %c0_i32_0 = arith.constant 0 : i32
    %c0_i32_1 = arith.constant 0 : i32
    return %arg0, %c0_i32, %c0_i32_0 : i32, i32, i32
  }
  func.func @transform_2(%arg0: i32) -> (i32, i32, i32) {
    %c0_i32 = arith.constant 0 : i32
    %c0_i32_0 = arith.constant 0 : i32
    %c0_i32_1 = arith.constant 0 : i32
    return %arg0, %c0_i32, %c0_i32_0 : i32, i32, i32
  }
  func.func @transform_3(%arg0: i32) -> (i32, i32, i32) {
    %c0_i32 = arith.constant 0 : i32
    %c0_i32_0 = arith.constant 0 : i32
    %c0_i32_1 = arith.constant 0 : i32
    return %arg0, %c0_i32, %c0_i32_0 : i32, i32, i32
  }
  func.func @transform_4(%arg0: i32) -> (i32, i32, i32) {
    %c0_i32 = arith.constant 0 : i32
    %c0_i32_0 = arith.constant 0 : i32
    %c0_i32_1 = arith.constant 0 : i32
    return %arg0, %c0_i32, %c0_i32_0 : i32, i32, i32
  }
  func.func @transform_5(%arg0: i32) -> (i32, i32, i32) {
    %c0_i32 = arith.constant 0 : i32
    %c0_i32_0 = arith.constant 0 : i32
    %c0_i32_1 = arith.constant 0 : i32
    return %arg0, %c0_i32, %c0_i32_0 : i32, i32, i32
  }
  func.func @transform_6(%arg0: i32) -> (i32, i32, i32) {
    %c0_i32 = arith.constant 0 : i32
    %c0_i32_0 = arith.constant 0 : i32
    %c0_i32_1 = arith.constant 0 : i32
    return %arg0, %c0_i32, %c0_i32_0 : i32, i32, i32
  }
  func.func @transform_7(%arg0: i32) -> (i32, i32, i32) {
    %c0_i32 = arith.constant 0 : i32
    %c0_i32_0 = arith.constant 0 : i32
    %c0_i32_1 = arith.constant 0 : i32
    return %arg0, %c0_i32, %c0_i32_0 : i32, i32, i32
  }
  func.func @transform_8(%arg0: i32) -> (i32, i32, i32) {
    %c0_i32 = arith.constant 0 : i32
    %c0_i32_0 = arith.constant 0 : i32
    %c0_i32_1 = arith.constant 0 : i32
    return %arg0, %c0_i32, %c0_i32_0 : i32, i32, i32
  }
  func.func @transform_9(%arg0: i32) -> (i32, i32, i32) {
    %c0_i32 = arith.constant 0 : i32
    %c0_i32_0 = arith.constant 0 : i32
    %c0_i32_1 = arith.constant 0 : i32
    return %arg0, %c0_i32, %c0_i32_0 : i32, i32, i32
  }
  func.func @transform_10(%arg0: i32) -> (i32, i32, i32) {
    %c0_i32 = arith.constant 0 : i32
    %c0_i32_0 = arith.constant 0 : i32
    %c0_i32_1 = arith.constant 0 : i32
    return %arg0, %c0_i32, %c0_i32_0 : i32, i32, i32
  }
  func.func @transform_11(%arg0: i32) -> (i32, i32, i32) {
    %c0_i32 = arith.constant 0 : i32
    %c0_i32_0 = arith.constant 0 : i32
    %c0_i32_1 = arith.constant 0 : i32
    return %arg0, %c0_i32, %c0_i32_0 : i32, i32, i32
  }
  func.func @transform_12(%arg0: i32) -> (i32, i32, i32) {
    %c0_i32 = arith.constant 0 : i32
    %c0_i32_0 = arith.constant 0 : i32
    %c0_i32_1 = arith.constant 0 : i32
    return %arg0, %c0_i32, %c0_i32_0 : i32, i32, i32
  }
  func.func @transform_13(%arg0: i32) -> (i32, i32, i32) {
    %c0_i32 = arith.constant 0 : i32
    %c0_i32_0 = arith.constant 0 : i32
    %c0_i32_1 = arith.constant 0 : i32
    return %arg0, %c0_i32, %c0_i32_0 : i32, i32, i32
  }
  func.func @transform_14(%arg0: i32) -> (i32, i32) {
    %c0_i32 = arith.constant 0 : i32
    %c0_i32_0 = arith.constant 0 : i32
    %c0_i32_1 = arith.constant 0 : i32
    return %c0_i32, %c0_i32_0 : i32, i32
  }
  func.func @transform_15(%arg0: i32) -> (i32, i32) {
    %c0_i32 = arith.constant 0 : i32
    %c0_i32_0 = arith.constant 0 : i32
    %c0_i32_1 = arith.constant 0 : i32
    return %c0_i32, %c0_i32_0 : i32, i32
  }
  func.func @transform_16(%arg0: i32) -> (i32, i32) {
    %c0_i32 = arith.constant 0 : i32
    %c0_i32_0 = arith.constant 0 : i32
    %c0_i32_1 = arith.constant 0 : i32
    return %c0_i32, %c0_i32_0 : i32, i32
  }
  func.func @transform_17(%arg0: i32) -> (i32, i32) {
    %c0_i32 = arith.constant 0 : i32
    %c0_i32_0 = arith.constant 0 : i32
    %c0_i32_1 = arith.constant 0 : i32
    return %c0_i32, %c0_i32_0 : i32, i32
  }
  func.func @transform_18(%arg0: i32) -> (i32, i32) {
    %c0_i32 = arith.constant 0 : i32
    %c0_i32_0 = arith.constant 0 : i32
    %c0_i32_1 = arith.constant 0 : i32
    return %c0_i32, %c0_i32_0 : i32, i32
  }
  func.func @transform_19(%arg0: i32) -> (i32, i32) {
    %c0_i32 = arith.constant 0 : i32
    %c0_i32_0 = arith.constant 0 : i32
    %c0_i32_1 = arith.constant 0 : i32
    return %c0_i32, %c0_i32_0 : i32, i32
  }
  func.func @transform_20(%arg0: i32) -> (i32, i32) {
    %c0_i32 = arith.constant 0 : i32
    %c0_i32_0 = arith.constant 0 : i32
    %c0_i32_1 = arith.constant 0 : i32
    return %c0_i32, %c0_i32_0 : i32, i32
  }
  func.func @transform_21(%arg0: i32) -> (i32, i32) {
    %c0_i32 = arith.constant 0 : i32
    %c0_i32_0 = arith.constant 0 : i32
    %c0_i32_1 = arith.constant 0 : i32
    return %c0_i32, %c0_i32_0 : i32, i32
  }
}

</mosaic_0001>

<bundles_post_ra>
// kernel: forward.1
= control target key start
LH: loop header
LB: loop body
LE: loop exit
PB: predicated region body
PF: predicated region fallthrough
CT: control target
= control target key end

     0   :  { %s2701_s26 = smov 0   ;;  %s3052_s0 = inlined_call_operand.vmem [shape: f32[3,2,16,6], index: 0, kind: input, shape index: {}]   ;;  %s3053_s1 = inlined_call_operand.vmem [shape: f32[3,18,16], index: 1, kind: input, shape index: {}]   ;;  %s3054_s2 = inlined_call_operand.vmem [shape: f32[3,1,16], index: 2, kind: input, shape index: {}]   ;;  %s3055_s3 = inlined_call_operand.vmem [shape: f32[3,48,16], index: 3, kind: input, shape index: {}]   ;;  %s3056_s4 = inlined_call_operand.vmem [shape: f32[3,1,16], index: 4, kind: input, shape index: {}]   ;;  %s3057_s5 = inlined_call_operand.vmem [shape: f32[3,6,16], index: 5, kind: input, shape index: {}]   ;;  %s3058_s6 = inlined_call_operand.vmem [shape: f32[3,1,16], index: 6, kind: input, shape index: {}]   ;;  %s3059_s7 = inlined_call_operand.vmem [shape: f32[3,48,16], index: 7, kind: input, shape index: {}]   ;;  %s3060_s8 = inlined_call_operand.vmem [shape: f32[3,1,16], index: 8, kind: input, shape index: {}]   ;;  %s3061_s9 = inlined_call_operand.vmem [shape: f32[3,48,16], index: 9, kind: input, shape index: {}]   ;;  %s3062_s10 = inlined_call_operand.vmem [shape: f32[3,1,16], index: 10, kind: input, shape index: {}]   ;;  %s3063_s11 = inlined_call_operand.vmem [shape: f32[3,16,32], index: 11, kind: input, shape index: {}]   ;;  %s3064_s12 = inlined_call_operand.vmem [shape: f32[3,1,32], index: 12, kind: input, shape index: {}]   ;;  %s3065_s13 = inlined_call_operand.vmem [shape: f32[3,32,32], index: 13, kind: input, shape index: {}]   ;;  %s3066_s14 = inlined_call_operand.vmem [shape: f32[1,32], index: 14, kind: input, shape index: {}]   ;;  %s3067_s15 = inlined_call_operand.vmem [shape: f32[32,32], index: 15, kind: input, shape index: {}]   ;;  %s3068_s16 = inlined_call_operand.vmem [shape: f32[1,32], index: 16, kind: input, shape index: {}]   ;;  %s3069_s17 = inlined_call_operand.vmem [shape: f32[1,32], index: 17, kind: input, shape index: {}]   ;;  %s3070_s18 = inlined_call_operand.vmem [shape: f32[1,32], index: 18, kind: input, shape index: {}]   ;;  %s3071_s19 = inlined_call_operand.vmem [shape: f32[32,1], index: 19, kind: input, shape index: {}]   ;;  %s3072_s20 = inlined_call_operand.<no memory space> [shape: f32[1,1], index: 20, kind: input, shape index: {}]   ;;  %s3073_s21 = inlined_call_operand.vmem [shape: f32[2,1], index: 21, kind: output, shape index: {}]  }
   0x1   :  { %3076 = sst [smem:[#allocation4_spill]] %s3052_s0  ;;  %v26_v0 = vstv %s3072_s20 }
   0x2   :  { %3077 = sst [smem:[#allocation5_spill]] %s3053_s1  ;;  %27 = vst [vmem:[#allocation3] sm:$0x1] %v26_v0 }
   0x3   :  { %3078 = sst [smem:[#allocation6_spill]] %s3054_s2 }
   0x4   :  { %3079 = sst [smem:[#allocation7_spill]] %s3055_s3 }
   0x5   :  { %3080 = sst [smem:[#allocation8_spill]] %s3056_s4 }
   0x6   :  { %3081 = sst [smem:[#allocation9_spill]] %s3057_s5 }
   0x7 LB: > { %s2707_s27 = sadd.s32 4294967295, %s2577_s26   ;;  %p2320_p0 = scmp.ge.s32.totalorder %s2577_s26, 1  ;;  %s2577_s26 = sphi %s2701_s26, %s33_s26  }
   0x8   : > { %p701_p1 = scmp.lt.s32.totalorder %s2577_s26, 4 }
   0xa   : > { %p702_p2 = pnand %p2320_p0, %p701_p1 }
   0xb   : > { %p808_p3 = scmp.lt.s32.totalorder (!%p702_p2), %s2707_s27, 2  ;;  %s3082_s4 = sld [smem:[#allocation4_spill]] (!%p702_p2) }
   0xc   : > { %705 = sbr.rel (%p702_p2) target bundleno = 2470 (0x9a6), region = 104  ;;  %s3083_s2 = sld [smem:[#allocation5_spill]] (!%p702_p2) }
   0xd   : > { %s3085_s24 = sld [smem:[#allocation6_spill]] (!%p702_p2)  ;;  %s3074_s22 = smov (!%p702_p2), 16  }
   0xe   : > { %s3086_s0 = sld [smem:[#allocation9_spill]] (!%p702_p2)  ;;  %p2361_p4 = scmp.ne.s32.totalorder (!%p702_p2), %s2707_s27, 0 }
  0x11   : > { %s2713_s20 = scalar_select %p808_p3, %s2707_s27, 2  ;;  %v2579_v1 = vmov 0.0   ;;  %vm874_vm0 = vcmask 1046528   ;;  %vm947_vm1 = vcmask 1041408   ;;  %vm902_vm2 = vcmask 1045504  }
  0x12   : > { %v2726_v2 = vrot.slane %v2579_v1, 1  ;;  %vm927_vm3 = vcmask 48128   ;;  %vm934_vm4 = vcmask 97280   ;;  %vm968_vm5 = vcmask 146432  }
  0x13   : > { %s2373_s3 = sshll.u32 %s2713_s20, 5  ;;  %s2550_s28 = smul.u32 24, %s2713_s20  ;;  %vm1123_vm6 = vcmask 130048   ;;  %vm1130_vm7 = vcmask 261120   ;;  %vm1166_vm8 = vcmask 392192   ;;  %vm1407_vm9 = vcmask 1043456  }
  0x14   : > { %s812_s30 = scalar_lea.vmem %s3082_s4, %s2373_s3  ;;  %s2723_s23 = scalar_lea.vmem %s3065_s13, %s2373_s3  ;;  %vm2584_vm10 = vmmov 0   ;;  %vm1775_vm11 = vcmask 1041409  }
  0x15   : > { %v2728_v3 = vld [vmem:[%s812_s30 + $0x8] sm:$0xff]  ;;  %v2730_v4 = vld [vmem:[%s812_s30] sm:$0xff]  ;;  %s817_s25 = scalar_lea.vmem %s3083_s2, %s2550_s28  ;;  %s2580_s3 = smov 6   ;;  %v2746_v14 = vld [vmem:[%s812_s30 + $0x10] sm:$0xff] }
  0x16   : > { %v878_v5 = vrot.slane %v2728_v3, 1  ;;  %v876_v6 = vrot.slane %v2730_v4, 1  ;;  %v960_v7 = vld [vmem:[%s817_s25 + $0x10] sm:$0x3]  ;;  %v959_v8 = vld [vmem:[%s817_s25 + $0x8] sm:$0xff]  ;;  %v903_v10 = vrot.slane %v2730_v4, 2  ;;  %s820_s2 = scalar_lea.vmem %s3085_s24, %s2713_s20 }
  0x17   : > { %2436 = vmatprep.subr.msk.mxu0 %vm947_vm1, %v960_v7  ;;  %v958_v11 = vld [vmem:[%s817_s25] sm:$0xff]  ;;  %v904_v13 = vrot.slane %v2728_v3, 2  ;;  %v2748_v15 = vld [vmem:[%s812_s30 + $0x18] sm:$0xff]  ;;  %s2581_s28 = smov 12   ;;  %v880_v16 = vrot.slane %v2746_v14, 1  ;;  %v906_v21 = vrot.slane %v2746_v14, 2 }
  0x18   : > { %888 = vrot.lane.b32.xlu1 %v878_v5, %s2580_s3  ;;  %v877_v9 = vsel %vm874_vm0, %v2726_v2, %v876_v6  ;;  %2437 = vmatpush3.msk.msra.mxu0 %vm947_vm1, %v960_v7  ;;  %v879_v12 = vsel %vm874_vm0, %v876_v6, %v878_v5  ;;  %v882_v17 = vrot.slane %v2748_v15, 1  ;;  %v907_v22 = vrot.slane %v2748_v15, 2  ;;  %s2790_s29 = smul.u32 48, %s2713_s20  ;;  %s3084_s30 = sld [smem:[#allocation7_spill]]  ;;  %v2332_v60 = vld [vmem:[%s820_s2] ss:$0 sm:$0xff] }
  0x19   : > { %884 = vrot.lane.b32.xlu0 %v877_v9, %s2580_s3  ;;  %2438 = vmatprep.subr.mxu0 %v959_v8  ;;  %v905_v18 = vsel %vm902_vm2, %v903_v10, %v904_v13  ;;  %v881_v20 = vsel %vm874_vm0, %v2726_v2, %v880_v16  ;;  %s2325_s25 = sshll.u32 %s2713_s20, 3  ;;  %s3087_s24 = sld [smem:[#allocation8_spill]] }
  0x1a   : > { %2439 = vmatpush3.msra.mxu0 %v959_v8  ;;  %v883_v19 = vsel %vm874_vm0, %v880_v16, %v882_v17  ;;  %v908_v23 = vsel %vm902_vm2, %v906_v21, %v907_v22  ;;  %s832_s4 = scalar_lea.vmem %s3086_s0, %s2325_s25 }
  0x1b   : > { %2440 = vmatprep.subr.mxu0 %v958_v11 }
  0x1c   : > { %909 = vrot.lane.b32.xlu1 %v903_v10, %s2581_s28  ;;  %2441 = vmatpush3.msra.mxu0 %v958_v11 }
  0x1d   : > { %886 = vrot.lane.b32.xlu0 %v879_v12, %s2580_s3  ;;  %v1264_v12 = vld [vmem:[%s832_s4] sm:$0x3f] }
  0x1e   : > { %s825_s5 = scalar_lea.vmem %s3084_s30, %s2790_s29  ;;  %s2582_s30 = smov 32   ;;  %2466 = vmatprep.subr.msk.mxu0 %vm902_vm2, %v1264_v12 }
  0x1f   : > { %v1158_v58 = vld [vmem:[%s825_s5 + $0x28] sm:$0xff]  ;;  %v1157_v59 = vld [vmem:[%s825_s5 + $0x20] sm:$0xff]  ;;  %v1156_v61 = vld [vmem:[%s825_s5 + $0x18] sm:$0xff]  ;;  %s828_s2 = scalar_lea.vmem %s3087_s24, %s2713_s20  ;;  %s848_s24 = scalar_lea.vmem %s3061_s9, %s2790_s29 }
  0x20   : > { %913 = vrot.lane.b32.xlu1 %v904_v13, %s2581_s28  ;;  %2448 = vmatprep.subr.mxu1 %v1158_v58  ;;  %v1155_v0 = vld [vmem:[%s825_s5 + $0x10] sm:$0xff]  ;;  %v1154_v7 = vld [vmem:[%s825_s5 + $0x8] sm:$0xff]  ;;  %v1153_v11 = vld [vmem:[%s825_s5] sm:$0xff]  ;;  %s3088_s5 = smov 16  }
  0x21   : > { %911 = vrot.lane.b32.xlu0 %v905_v18, %s2581_s28  ;;  %2449 = vmatpush3.msra.mxu1 %v1158_v58 }
  0x22   : > { %2450 = vmatprep.subr.mxu1 %v1157_v59 }
  0x23   : > { %2451 = vmatpush3.msra.mxu1 %v1157_v59 }
  0x24   : > { %892 = vrot.lane.b32.xlu1 %v883_v19, %s2580_s3  ;;  %2452 = vmatprep.subr.mxu1 %v1156_v61 }
  0x25   : > { %890 = vrot.lane.b32.xlu0 %v881_v20, %s2580_s3  ;;  %2453 = vmatpush3.msra.mxu1 %v1156_v61 }
  0x26   : > { %2454 = vmatprep.subr.mxu1 %v1155_v0 }
  0x27   : > { %2455 = vmatpush3.msra.mxu1 %v1155_v0  ;;  %v2338_v0 = vld [vmem:[%s828_s2] ss:$0 sm:$0xff]  ;;  %s859_s2 = scalar_lea.vmem %s3064_s12, %s2713_s20 }
  0x28   : > { %915 = vrot.lane.b32.xlu1 %v906_v21, %s2581_s28  ;;  %2456 = vmatprep.subr.mxu1 %v1154_v7 }
  0x29   : > { %894 = vrot.lane.b32.xlu0 %v882_v17, %s2580_s3  ;;  %2457 = vmatpush3.msra.mxu1 %v1154_v7  ;;  %s843_s3 = scalar_lea.vmem %s3060_s8, %s2713_s20 }
  0x2a   : > { %2458 = vmatprep.subr.mxu1 %v1153_v11 }
  0x2b   : > { %2459 = vmatpush3.msra.mxu1 %v1153_v11 }
  0x2c   : > { %919 = vrot.lane.b32.xlu1 %v907_v22, %s2581_s28 }
  0x2d   : > { %917 = vrot.lane.b32.xlu0 %v908_v23, %s2581_s28  ;;  %s835_s28 = scalar_lea.vmem %s3058_s6, %s2713_s20 }
  0x8a   : > { %v889_v24 = vpop.permute.xlu1 %888 }
  0x8b   : > { %v885_v25 = vpop.permute.xlu0 %884  ;;  %v930_v29 = vsel %vm927_vm3, %v2728_v3, %v889_v24 }
  0x8c   : > { %v928_v28 = vsel %vm927_vm3, 0.0, %v885_v25 }
  0x8e   : > { %v910_v26 = vpop.permute.xlu1 %909 }
  0x8f   : > { %v887_v27 = vpop.permute.xlu0 %886  ;;  %v935_v30 = vsel %vm934_vm4, %v928_v28, %v910_v26 }
  0x90   : > { %v929_v32 = vsel %vm927_vm3, %v2730_v4, %v887_v27  ;;  %v948_v37 = vrot.slane %v935_v30, 6 }
  0x92   : > { %v914_v31 = vpop.permute.xlu1 %913 }
  0x93   : > { %v937_v33 = vsel %vm934_vm4, %v930_v29, %v914_v31  ;;  %v912_v34 = vpop.permute.xlu0 %911 }
  0x94   : > { %v951_v35 = vrot.slane %v937_v33, 6  ;;  %v936_v36 = vsel %vm934_vm4, %v929_v32, %v912_v34 }
  0x95   : > { %v949_v38 = vrot.slane %v936_v36, 6 }
  0x96   : > { %v893_v39 = vpop.permute.xlu1 %892 }
  0x97   : > { %v891_v40 = vpop.permute.xlu0 %890  ;;  %v950_v41 = vsel %vm947_vm1, %v948_v37, %v949_v38  ;;  %v952_v42 = vsel %vm947_vm1, %v949_v38, %v951_v35  ;;  %v932_v49 = vsel %vm927_vm3, %v2746_v14, %v893_v39 }
  0x98   : > { %2442 = vmatprep.mubr.msk.f32.mxu0 %vm968_vm5, %v950_v41  ;;  %v931_v45 = vsel %vm927_vm3, 0.0, %v891_v40 }
  0x99   : > { %2443 = vmatmul.mubr.msk.f32.vlgmr.msra.gmra.mxu0 %vm968_vm5, %v952_v42 }
  0x9a   : > { %v916_v43 = vpop.permute.xlu1 %915  ;;  %2467 = vmatpush3.msk.msra.mxu0 %vm902_vm2, %v1264_v12 }
  0x9b   : > { %v895_v44 = vpop.permute.xlu0 %894  ;;  %v938_v46 = vsel %vm934_vm4, %v931_v45, %v916_v43 }
  0x9c   : > { %v933_v47 = vsel %vm927_vm3, %v2748_v15, %v895_v44  ;;  %v953_v54 = vrot.slane %v938_v46, 6 }
  0x9e   : > { %v920_v48 = vpop.permute.xlu1 %919 }
  0x9f   : > { %v940_v50 = vsel %vm934_vm4, %v933_v47, %v920_v48  ;;  %v918_v51 = vpop.permute.xlu0 %917 }
  0xa0   : > { %v956_v52 = vrot.slane %v940_v50, 6  ;;  %v939_v53 = vsel %vm934_vm4, %v932_v49, %v918_v51 }
  0xa1   : > { %v954_v55 = vrot.slane %v939_v53, 6 }
  0xa3   : > { %v955_v56 = vsel %vm947_vm1, %v953_v54, %v954_v55  ;;  %v957_v57 = vsel %vm947_vm1, %v954_v55, %v956_v52 }
  0xa4   : > { %2445 = vmatprep.mubr.msk.f32.mxu0 %vm968_vm5, %v955_v56 }
  0xa5   : > { %2446 = vmatmul.mubr.msk.f32.gmra.mxu0 %vm968_vm5, %v957_v57 }
  0xa6   : > { %2468 = vmatprep.mubr.msk.f32.mxu0 %vm927_vm3, %v2730_v4 }
  0xa9   : > { %2469 = vmatmul.mubr.msk.f32.vlgmr.msra.gmra.mxu0 %vm927_vm3, %v2728_v3 }
  0xaa   : > { %2471 = vmatprep.mubr.msk.f32.mxu0 %vm927_vm3, %v2746_v14 }
  0xad   : > { %2472 = vmatmul.mubr.msk.f32.gmra.mxu0 %vm927_vm3, %v2748_v15 }
 0x159   : > { %v2444_v62 = vpop.f32.mrf.mxu0 }
 0x15a   : > { %v1052_v63 = vadd.f32 %v2444_v62, %v2332_v60 }
 0x15b   : > { %v1046_v4 = vpop.f32.mrf.mxu0 }
 0x15c   : > { %v1066_v5 = vmax.f32 %v1052_v63, 0.0  ;;  %v1047_v6 = vadd.f32 %v2332_v60, %v1046_v4  ;;  %v2343_v4 = vld [vmem:[%s835_s28] ss:$0 sm:$0xff] }
 0x15e   : > { %v1065_v8 = vmax.f32 %v1047_v6, 0.0  ;;  %v1100_v9 = vrot.slane %v1066_v5, 2  ;;  %v1075_v10 = vrot.slane %v1066_v5, 1 }
 0x160   : > { %v1073_v13 = vrot.slane %v1065_v8, 1  ;;  %1109 = vrot.lane.b32.xlu1 %v1100_v9, %s2582_s30  ;;  %1085 = vrot.lane.b32.xlu0 %v1075_v10, %s3074_s22  ;;  %v1099_v16 = vrot.slane %v1065_v8, 2 }
 0x162   : > { %v1074_v17 = vsel %vm874_vm0, %v2726_v2, %v1073_v13  ;;  %v1076_v21 = vsel %vm874_vm0, %v1073_v13, %v1075_v10  ;;  %v1101_v22 = vsel %vm902_vm2, %v1099_v16, %v1100_v9 }
 0x164   : > { %1105 = vrot.lane.b32.xlu1 %v1099_v16, %s2582_s30  ;;  %1081 = vrot.lane.b32.xlu0 %v1074_v17, %s3074_s22 }
 0x165   : > { %v2447_v18 = vpop.f32.mrf.mxu0 }
 0x166   : > { %v1062_v19 = vadd.f32 %v2447_v18, %v2332_v60 }
 0x167   : > { %v1056_v20 = vpop.f32.mrf.mxu0 }
 0x168   : > { %v1068_v23 = vmax.f32 %v1062_v19, 0.0  ;;  %v1057_v24 = vadd.f32 %v2332_v60, %v1056_v20  ;;  %1083 = vrot.lane.b32.xlu1 %v1076_v21, %s3074_s22  ;;  %1107 = vrot.lane.b32.xlu0 %v1101_v22, %s2582_s30 }
 0x169   : > { %v2470_v63 = vpop.f32.mrf.mxu0 }
 0x16a   : > { %v1067_v3 = vmax.f32 %v1057_v24, 0.0  ;;  %v1079_v25 = vrot.slane %v1068_v23, 1  ;;  %v1103_v15 = vrot.slane %v1068_v23, 2  ;;  %v1355_v9 = vadd.f32 %v2470_v63, %v2343_v4 }
 0x16b   : > { %v1349_v7 = vpop.f32.mrf.mxu0 }
 0x16c   : > { %v1077_v26 = vrot.slane %v1067_v3, 1  ;;  %1091 = vrot.lane.b32.xlu0 %v1079_v25, %s3074_s22  ;;  %v1102_v14 = vrot.slane %v1067_v3, 2  ;;  %v1350_v16 = vadd.f32 %v2343_v4, %v1349_v7 }
 0x16e   : > { %1111 = vrot.lane.b32.xlu1 %v1102_v14, %s2582_s30  ;;  %v1078_v27 = vsel %vm874_vm0, %v2726_v2, %v1077_v26  ;;  %v1080_v28 = vsel %vm874_vm0, %v1077_v26, %v1079_v25  ;;  %v1104_v29 = vsel %vm902_vm2, %v1102_v14, %v1103_v15  ;;  %v2876_v26 = vrot.slane %v2579_v1, 2 }
 0x170   : > { %1087 = vrot.lane.b32.xlu0 %v1078_v27, %s3074_s22  ;;  %v2473_v27 = vpop.f32.mrf.mxu0 }
 0x172   : > { %1089 = vrot.lane.b32.xlu1 %v1080_v28, %s3074_s22  ;;  %s2864_s22 = scalar_lea.vmem %s3059_s7, %s2790_s29  ;;  %s2374_s29 = sshll.u32 %s2713_s20, 4 }
 0x173   : > { %v1464_v10 = vld [vmem:[%s2864_s22 + $0x20] sm:$0xff]  ;;  %v1463_v17 = vld [vmem:[%s2864_s22 + $0x18] sm:$0xff]  ;;  %v1462_v20 = vld [vmem:[%s2864_s22 + $0x10] sm:$0xff]  ;;  %s856_s0 = scalar_lea.vmem %s3063_s11, %s2374_s29 }
 0x174   : > { %1113 = vrot.lane.b32.xlu0 %v1104_v29, %s2582_s30  ;;  %v1460_v14 = vld [vmem:[%s2864_s22] sm:$0xff] }
 0x176   : > { %1115 = vrot.lane.b32.xlu1 %v1103_v15, %s2582_s30 }
 0x1d2   : > { %v1110_v30 = vpop.permute.xlu1 %1109  ;;  %v1086_v31 = vpop.permute.xlu0 %1085 }
 0x1d3   : > { %v1126_v2 = vsel %vm1123_vm6, %v1066_v5, %v1086_v31  ;;  %v1465_v5 = vld [vmem:[%s2864_s22 + $0x28] sm:$0xff] }
 0x1d4   : > { %v1133_v35 = vsel %vm1130_vm7, %v1126_v2, %v1110_v30  ;;  %2474 = vmatprep.subr.mxu1 %v1465_v5  ;;  %v1365_v30 = vadd.f32 %v2473_v27, %v2343_v4  ;;  %v1359_v2 = vpop.f32.mrf.mxu0  ;;  %v1656_v27 = vld [vmem:[%s848_s24 + $0x20] sm:$0xff] }
 0x1d5   : > { %v1146_v41 = vrot.slane %v1133_v35, 6 }
 0x1d6   : > { %v1106_v32 = vpop.permute.xlu1 %1105  ;;  %v1082_v33 = vpop.permute.xlu0 %1081 }
 0x1d7   : > { %v1124_v34 = vsel %vm1123_vm6, 0.0, %v1082_v33 }
 0x1d8   : > { %v1131_v36 = vsel %vm1130_vm7, %v1124_v34, %v1106_v32 }
 0x1d9   : > { %v1143_v42 = vrot.slane %v1131_v36, 6 }
 0x1da   : > { %v1084_v37 = vpop.permute.xlu1 %1083  ;;  %v1108_v38 = vpop.permute.xlu0 %1107 }
 0x1db   : > { %v1125_v39 = vsel %vm1123_vm6, %v1065_v8, %v1084_v37 }
 0x1dc   : > { %v1132_v40 = vsel %vm1130_vm7, %v1125_v39, %v1108_v38  ;;  %v1360_v38 = vadd.f32 %v2343_v4, %v1359_v2 }
 0x1dd   : > { %v1144_v43 = vrot.slane %v1132_v40, 6 }
 0x1de   : > { %v1092_v44 = vpop.permute.xlu0 %1091 }
 0x1df   : > { %v1145_v45 = vsel %vm947_vm1, %v1143_v42, %v1144_v43  ;;  %v1147_v46 = vsel %vm947_vm1, %v1144_v43, %v1146_v41  ;;  %v1129_v55 = vsel %vm1123_vm6, %v1068_v23, %v1092_v44  ;;  %v1461_v23 = vld [vmem:[%s2864_s22 + $0x8] sm:$0xff]  ;;  %s851_s22 = scalar_lea.vmem %s3062_s10, %s2713_s20 }
 0x1e0   : > { %v1112_v47 = vpop.permute.xlu1 %1111  ;;  %2460 = vmatprep.mubr.msk.f32.mxu1 %vm1166_vm8, %v1145_v45 }
 0x1e1   : > { %2461 = vmatmul.mubr.msk.f32.vlgmr.msra.gmra.mxu1 %vm1166_vm8, %v1147_v46 }
 0x1e2   : > { %v1088_v48 = vpop.permute.xlu0 %1087  ;;  %2475 = vmatpush3.msra.mxu1 %v1465_v5 }
 0x1e3   : > { %v1127_v49 = vsel %vm1123_vm6, 0.0, %v1088_v48  ;;  %2476 = vmatprep.subr.mxu1 %v1464_v10 }
 0x1e4   : > { %v1090_v50 = vpop.permute.xlu1 %1089  ;;  %v1134_v51 = vsel %vm1130_vm7, %v1127_v49, %v1112_v47  ;;  %2477 = vmatpush3.msra.mxu1 %v1464_v10 }
 0x1e5   : > { %v1128_v52 = vsel %vm1123_vm6, %v1067_v3, %v1090_v50  ;;  %v1148_v56 = vrot.slane %v1134_v51, 6  ;;  %2478 = vmatprep.subr.mxu1 %v1463_v17 }
 0x1e6   : > { %v1114_v53 = vpop.permute.xlu0 %1113  ;;  %2479 = vmatpush3.msra.mxu1 %v1463_v17 }
 0x1e7   : > { %v1135_v54 = vsel %vm1130_vm7, %v1128_v52, %v1114_v53  ;;  %2480 = vmatprep.subr.mxu1 %v1462_v20 }
 0x1e8   : > { %v1149_v57 = vrot.slane %v1135_v54, 6  ;;  %v1116_v58 = vpop.permute.xlu1 %1115  ;;  %2481 = vmatpush3.msra.mxu1 %v1462_v20 }
 0x1e9   : > { %v1136_v59 = vsel %vm1130_vm7, %v1129_v55, %v1116_v58  ;;  %2482 = vmatprep.subr.mxu1 %v1461_v23 }
 0x1ea   : > { %v1151_v60 = vrot.slane %v1136_v59, 6  ;;  %v1150_v61 = vsel %vm947_vm1, %v1148_v56, %v1149_v57  ;;  %2483 = vmatpush3.msra.mxu1 %v1461_v23 }
 0x1eb   : > { %2463 = vmatprep.mubr.msk.f32.mxu1 %vm1166_vm8, %v1150_v61  ;;  %2484 = vmatprep.subr.mxu1 %v1460_v14 }
 0x1ec   : > { %v1152_v62 = vsel %vm947_vm1, %v1149_v57, %v1151_v60  ;;  %2485 = vmatpush3.msra.mxu1 %v1460_v14  ;;  %v1657_v14 = vld [vmem:[%s848_s24 + $0x28] sm:$0xff] }
 0x1ed   : > { %2464 = vmatmul.mubr.msk.f32.gmra.mxu1 %vm1166_vm8, %v1152_v62  ;;  %2510 = vmatprep.subr.mxu1 %v2579_v1 }
 0x1ee   : > { %2492 = vmatprep.subr.mxu0 %v1657_v14 }
 0x1ef   : > { %2493 = vmatpush3.msra.mxu0 %v1657_v14 }
 0x1f0   : > { %2494 = vmatprep.subr.mxu0 %v1656_v27 }
 0x1f1   : > { %2495 = vmatpush3.msra.mxu0 %v1656_v27 }
 0x2a1   : > { %v2462_v6 = vpop.f32.mrf.mxu1 }
 0x2a2   : > { %v1247_v8 = vadd.f32 %v2462_v6, %v2338_v0 }
 0x2a3   : > { %v1241_v11 = vpop.f32.mrf.mxu1 }
 0x2a4   : > { %v1261_v12 = vmax.f32 %v1247_v8, 0.0  ;;  %v1242_v13 = vadd.f32 %v2338_v0, %v1241_v11 }
 0x2a6   : > { %v1369_v18 = vadd.f32 %v1355_v9, %v1261_v12  ;;  %v1260_v19 = vmax.f32 %v1242_v13, 0.0 }
 0x2a8   : > { %v2870_v21 = vmax.f32 %v1369_v18, 0.0  ;;  %v1368_v22 = vadd.f32 %v1350_v16, %v1260_v19 }
 0x2aa   : > { %v1372_v24 = vmax.f32 %v1368_v22, 0.0  ;;  %v1409_v3 = vrot.slane %v2870_v21, 4  ;;  %v1383_v25 = vrot.slane %v2870_v21, 2 }
 0x2ac   : > { %1418 = vrot.lane.b32.xlu1 %v1409_v3, %s2582_s30  ;;  %1393 = vrot.lane.b32.xlu0 %v1383_v25, %s3088_s5  ;;  %v1381_v15 = vrot.slane %v1372_v24, 2  ;;  %v1408_v31 = vrot.slane %v1372_v24, 4 }
 0x2ad   : > { %v2465_v28 = vpop.f32.mrf.mxu1 }
 0x2ae   : > { %v1257_v29 = vadd.f32 %v2465_v28, %v2338_v0  ;;  %v1382_v32 = vsel %vm902_vm2, %v2876_v26, %v1381_v15  ;;  %v1384_v39 = vsel %vm902_vm2, %v1381_v15, %v1383_v25  ;;  %v1410_v40 = vsel %vm1407_vm9, %v1408_v31, %v1409_v3  ;;  %v2349_v15 = vld [vmem:[%s843_s3] ss:$0 sm:$0xff]  ;;  %v1655_v28 = vld [vmem:[%s848_s24 + $0x18] sm:$0xff] }
 0x2af   : > { %v1251_v33 = vpop.f32.mrf.mxu1  ;;  %2496 = vmatprep.subr.mxu0 %v1655_v28 }
 0x2b0   : > { %v1263_v34 = vmax.f32 %v1257_v29, 0.0  ;;  %v1252_v35 = vadd.f32 %v2338_v0, %v1251_v33  ;;  %1414 = vrot.lane.b32.xlu1 %v1408_v31, %s2582_s30  ;;  %1389 = vrot.lane.b32.xlu0 %v1382_v32, %s3088_s5  ;;  %v1654_v31 = vld [vmem:[%s848_s24 + $0x10] sm:$0xff] }
 0x2b1   : > { %2497 = vmatpush3.msra.mxu0 %v1655_v28 }
 0x2b2   : > { %v1371_v36 = vadd.f32 %v1365_v30, %v1263_v34  ;;  %v1262_v37 = vmax.f32 %v1252_v35, 0.0  ;;  %2498 = vmatprep.subr.mxu0 %v1654_v31  ;;  %v1653_v34 = vld [vmem:[%s848_s24 + $0x8] sm:$0xff] }
 0x2b3   : > { %2499 = vmatpush3.msra.mxu0 %v1654_v31  ;;  %v1763_v31 = vld [vmem:[%s856_s0 + $0x8] sm:$0xff] }
 0x2b4   : > { %v2888_v41 = vmax.f32 %v1371_v36, 0.0  ;;  %v1370_v42 = vadd.f32 %v1360_v38, %v1262_v37  ;;  %1391 = vrot.lane.b32.xlu1 %v1384_v39, %s3088_s5  ;;  %1416 = vrot.lane.b32.xlu0 %v1410_v40, %s2582_s30  ;;  %v1652_v38 = vld [vmem:[%s848_s24] sm:$0xff] }
 0x2b5   : > { %2500 = vmatprep.subr.mxu0 %v1653_v34 }
 0x2b6   : > { %v1374_v43 = vmax.f32 %v1370_v42, 0.0  ;;  %v1387_v44 = vrot.slane %v2888_v41, 2  ;;  %v1412_v49 = vrot.slane %v2888_v41, 4  ;;  %2501 = vmatpush3.msra.mxu0 %v1653_v34 }
 0x2b7   : > { %2502 = vmatprep.subr.mxu0 %v1652_v38 }
 0x2b8   : > { %1399 = vrot.lane.b32.xlu0 %v1387_v44, %s3088_s5  ;;  %v1411_v45 = vrot.slane %v1374_v43, 4  ;;  %v1385_v46 = vrot.slane %v1374_v43, 2  ;;  %2503 = vmatpush3.msra.mxu0 %v1652_v38 }
 0x2ba   : > { %1420 = vrot.lane.b32.xlu1 %v1411_v45, %s2582_s30  ;;  %v1386_v47 = vsel %vm902_vm2, %v2876_v26, %v1385_v46  ;;  %v1388_v48 = vsel %vm902_vm2, %v1385_v46, %v1387_v44  ;;  %v1413_v50 = vsel %vm1407_vm9, %v1411_v45, %v1412_v49 }
 0x2bc   : > { %1395 = vrot.lane.b32.xlu0 %v1386_v47, %s3088_s5 }
 0x2be   : > { %1397 = vrot.lane.b32.xlu1 %v1388_v48, %s3088_s5 }
 0x2c0   : > { %1422 = vrot.lane.b32.xlu0 %v1413_v50, %s2582_s30 }
 0x2c2   : > { %1424 = vrot.lane.b32.xlu1 %v1412_v49, %s2582_s30 }
 0x31e   : > { %v1419_v51 = vpop.permute.xlu1 %1418  ;;  %v1394_v52 = vpop.permute.xlu0 %1393 }
 0x31f   : > { %v1434_v55 = vsel %vm1123_vm6, %v2870_v21, %v1394_v52 }
 0x320   : > { %v1440_v57 = vsel %vm1130_vm7, %v1434_v55, %v1419_v51 }
 0x321   : > { %v1453_v63 = vrot.slane %v1440_v57, 4 }
 0x322   : > { %v1415_v53 = vpop.permute.xlu1 %1414  ;;  %v1390_v54 = vpop.permute.xlu0 %1389 }
 0x323   : > { %v1432_v56 = vsel %vm1123_vm6, 0.0, %v1390_v54 }
 0x324   : > { %v1438_v58 = vsel %vm1130_vm7, %v1432_v56, %v1415_v53 }
 0x325   : > { %v1450_v0 = vrot.slane %v1438_v58, 4 }
 0x326   : > { %v1392_v59 = vpop.permute.xlu1 %1391  ;;  %v1417_v60 = vpop.permute.xlu0 %1416 }
 0x327   : > { %v1433_v61 = vsel %vm1123_vm6, %v1372_v24, %v1392_v59 }
 0x328   : > { %v1439_v62 = vsel %vm1130_vm7, %v1433_v61, %v1417_v60 }
 0x329   : > { %v1451_v4 = vrot.slane %v1439_v62, 4 }
 0x32a   : > { %v1400_v5 = vpop.permute.xlu0 %1399 }
 0x32b   : > { %v1454_v6 = vsel %vm1407_vm9, %v1451_v4, %v1453_v63  ;;  %v1452_v7 = vsel %vm1407_vm9, %v1450_v0, %v1451_v4  ;;  %v1437_v18 = vsel %vm1123_vm6, %v2888_v41, %v1400_v5 }
 0x32c   : > { %v1421_v8 = vpop.permute.xlu1 %1420  ;;  %2486 = vmatprep.mubr.msk.f32.mxu1 %vm1166_vm8, %v1452_v7 }
 0x32d   : > { %2487 = vmatmul.mubr.msk.f32.vlgmr.msra.gmra.mxu1 %vm1166_vm8, %v1454_v6 }
 0x32e   : > { %v1396_v9 = vpop.permute.xlu0 %1395  ;;  %2511 = vmatpush3.msra.mxu1 %v1763_v31 }
 0x32f   : > { %v1435_v10 = vsel %vm1123_vm6, 0.0, %v1396_v9  ;;  %2512 = vmatprep.subr.mxu1 %v2579_v1 }
 0x330   : > { %v1398_v11 = vpop.permute.xlu1 %1397  ;;  %v1441_v12 = vsel %vm1130_vm7, %v1435_v10, %v1421_v8 }
 0x331   : > { %v1436_v13 = vsel %vm1123_vm6, %v1374_v43, %v1398_v11  ;;  %v1455_v19 = vrot.slane %v1441_v12, 4 }
 0x332   : > { %v1423_v16 = vpop.permute.xlu0 %1422 }
 0x333   : > { %v1442_v17 = vsel %vm1130_vm7, %v1436_v13, %v1423_v16 }
 0x334   : > { %v1456_v20 = vrot.slane %v1442_v17, 4  ;;  %v1425_v22 = vpop.permute.xlu1 %1424 }
 0x335   : > { %v1443_v23 = vsel %vm1130_vm7, %v1437_v18, %v1425_v22 }
 0x336   : > { %v1458_v24 = vrot.slane %v1443_v23, 4  ;;  %v1457_v3 = vsel %vm1407_vm9, %v1455_v19, %v1456_v20 }
 0x337   : > { %2489 = vmatprep.mubr.msk.f32.mxu1 %vm1166_vm8, %v1457_v3 }
 0x338   : > { %v1459_v25 = vsel %vm1407_vm9, %v1456_v20, %v1458_v24 }
 0x339   : > { %2490 = vmatmul.mubr.msk.f32.gmra.mxu1 %vm1166_vm8, %v1459_v25 }
 0x33a   : > { %2514 = vmatprep.mubr.msk.f32.mxu1 %vm2584_vm10, %v2579_v1 }
 0x3ed   : > { %v2488_v29 = vpop.f32.mrf.mxu1 }
 0x3ee   : > { %v1553_v30 = vadd.f32 %v2488_v29, %v2349_v15 }
 0x3ef   : > { %v1547_v32 = vpop.f32.mrf.mxu1 }
 0x3f0   : > { %v1567_v33 = vmax.f32 %v1553_v30, 0.0  ;;  %v1548_v2 = vadd.f32 %v2349_v15, %v1547_v32  ;;  %v1762_v32 = vld [vmem:[%s856_s0] sm:$0xff] }
 0x3f1   : > { %2513 = vmatpush3.msra.mxu1 %v1762_v32 }
 0x3f2   : > { %v1566_v35 = vmax.f32 %v1548_v2, 0.0  ;;  %v1601_v36 = vrot.slane %v1567_v33, 4  ;;  %v1576_v37 = vrot.slane %v1567_v33, 2  ;;  %v2354_v2 = vld [vmem:[%s851_s22] ss:$0 sm:$0xff] }
 0x3f4   : > { %v1574_v39 = vrot.slane %v1566_v35, 2  ;;  %1610 = vrot.lane.b32.xlu1 %v1601_v36, %s2582_s30  ;;  %1586 = vrot.lane.b32.xlu0 %v1576_v37, %s3088_s5  ;;  %v1600_v40 = vrot.slane %v1566_v35, 4 }
 0x3f6   : > { %v1575_v42 = vsel %vm902_vm2, %v2876_v26, %v1574_v39  ;;  %v1577_v46 = vsel %vm902_vm2, %v1574_v39, %v1576_v37  ;;  %v1602_v47 = vsel %vm1407_vm9, %v1600_v40, %v1601_v36 }
 0x3f8   : > { %1606 = vrot.lane.b32.xlu1 %v1600_v40, %s2582_s30  ;;  %1582 = vrot.lane.b32.xlu0 %v1575_v42, %s3088_s5 }
 0x3f9   : > { %v2491_v43 = vpop.f32.mrf.mxu1 }
 0x3fa   : > { %v1563_v44 = vadd.f32 %v2491_v43, %v2349_v15 }
 0x3fb   : > { %v1557_v45 = vpop.f32.mrf.mxu1 }
 0x3fc   : > { %v1569_v48 = vmax.f32 %v1563_v44, 0.0  ;;  %v1558_v49 = vadd.f32 %v2349_v15, %v1557_v45  ;;  %1584 = vrot.lane.b32.xlu1 %v1577_v46, %s3088_s5  ;;  %1608 = vrot.lane.b32.xlu0 %v1602_v47, %s2582_s30 }
 0x3fe   : > { %v1568_v50 = vmax.f32 %v1558_v49, 0.0  ;;  %v1580_v51 = vrot.slane %v1569_v48, 2  ;;  %v1604_v55 = vrot.slane %v1569_v48, 4  ;;  %v2359_v49 = vld [vmem:[%s859_s2] ss:$0 sm:$0xff] }
 0x400   : > { %v1578_v52 = vrot.slane %v1568_v50, 2  ;;  %1592 = vrot.lane.b32.xlu0 %v1580_v51, %s3088_s5  ;;  %v1603_v53 = vrot.slane %v1568_v50, 4 }
 0x402   : > { %1612 = vrot.lane.b32.xlu1 %v1603_v53, %s2582_s30  ;;  %v1579_v54 = vsel %vm902_vm2, %v2876_v26, %v1578_v52  ;;  %v1581_v56 = vsel %vm902_vm2, %v1578_v52, %v1580_v51  ;;  %v1605_v57 = vsel %vm1407_vm9, %v1603_v53, %v1604_v55 }
 0x404   : > { %1588 = vrot.lane.b32.xlu0 %v1579_v54, %s3088_s5 }
 0x406   : > { %1590 = vrot.lane.b32.xlu1 %v1581_v56, %s3088_s5 }
 0x408   : > { %1614 = vrot.lane.b32.xlu0 %v1605_v57, %s2582_s30 }
 0x40a   : > { %1616 = vrot.lane.b32.xlu1 %v1604_v55, %s2582_s30 }
 0x466   : > { %v1611_v58 = vpop.permute.xlu1 %1610  ;;  %v1587_v59 = vpop.permute.xlu0 %1586 }
 0x467   : > { %v1626_v62 = vsel %vm1123_vm6, %v1567_v33, %v1587_v59 }
 0x468   : > { %v1632_v63 = vsel %vm1130_vm7, %v1626_v62, %v1611_v58 }
 0x469   : > { %v1645_v8 = vrot.slane %v1632_v63, 4 }
 0x46a   : > { %v1607_v60 = vpop.permute.xlu1 %1606  ;;  %v1583_v61 = vpop.permute.xlu0 %1582 }
 0x46b   : > { %v1624_v26 = vsel %vm1123_vm6, 0.0, %v1583_v61 }
 0x46c   : > { %v1630_v0 = vsel %vm1130_vm7, %v1624_v26, %v1607_v60 }
 0x46d   : > { %v1642_v9 = vrot.slane %v1630_v0, 4 }
 0x46e   : > { %v1585_v4 = vpop.permute.xlu1 %1584  ;;  %v1609_v5 = vpop.permute.xlu0 %1608 }
 0x46f   : > { %v1625_v6 = vsel %vm1123_vm6, %v1566_v35, %v1585_v4 }
 0x470   : > { %v1631_v7 = vsel %vm1130_vm7, %v1625_v6, %v1609_v5 }
 0x471   : > { %v1643_v10 = vrot.slane %v1631_v7, 4 }
 0x472   : > { %v1593_v11 = vpop.permute.xlu0 %1592 }
 0x473   : > { %v1646_v12 = vsel %vm1407_vm9, %v1643_v10, %v1645_v8  ;;  %v1644_v13 = vsel %vm1407_vm9, %v1642_v9, %v1643_v10  ;;  %v1629_v3 = vsel %vm1123_vm6, %v1569_v48, %v1593_v11 }
 0x474   : > { %v1613_v16 = vpop.permute.xlu1 %1612  ;;  %2504 = vmatprep.mubr.msk.f32.mxu0 %vm1166_vm8, %v1644_v13 }
 0x475   : > { %2505 = vmatmul.mubr.msk.f32.vlgmr.msra.gmra.mxu0 %vm1166_vm8, %v1646_v12 }
 0x476   : > { %v1589_v17 = vpop.permute.xlu0 %1588 }
 0x477   : > { %v1627_v18 = vsel %vm1123_vm6, 0.0, %v1589_v17 }
 0x478   : > { %v1591_v19 = vpop.permute.xlu1 %1590  ;;  %v1633_v20 = vsel %vm1130_vm7, %v1627_v18, %v1613_v16 }
 0x479   : > { %v1628_v22 = vsel %vm1123_vm6, %v1568_v50, %v1591_v19  ;;  %v1647_v25 = vrot.slane %v1633_v20, 4 }
 0x47a   : > { %v1615_v23 = vpop.permute.xlu0 %1614 }
 0x47b   : > { %v1634_v24 = vsel %vm1130_vm7, %v1628_v22, %v1615_v23 }
 0x47c   : > { %v1648_v14 = vrot.slane %v1634_v24, 4  ;;  %v1617_v27 = vpop.permute.xlu1 %1616 }
 0x47d   : > { %v1635_v15 = vsel %vm1130_vm7, %v1629_v3, %v1617_v27 }
 0x47e   : > { %v1650_v28 = vrot.slane %v1635_v15, 4  ;;  %v1649_v29 = vsel %vm1407_vm9, %v1647_v25, %v1648_v14 }
 0x47f   : > { %2507 = vmatprep.mubr.msk.f32.mxu0 %vm1166_vm8, %v1649_v29 }
 0x480   : > { %v1651_v30 = vsel %vm1407_vm9, %v1648_v14, %v1650_v28 }
 0x481   : > { %2508 = vmatmul.mubr.msk.f32.gmra.mxu0 %vm1166_vm8, %v1651_v30 }
 0x535   : > { %v2506_v33 = vpop.f32.mrf.mxu0 }
 0x536   : > { %v1744_v35 = vadd.f32 %v2506_v33, %v2354_v2 }
 0x537   : > { %v1739_v34 = vpop.f32.mrf.mxu0 }
 0x538   : > { %v1756_v36 = vmax.f32 %v1744_v35, 0.0 }
 0x53a   : > { %v1758_v38 = vadd.f32 %v1756_v36, %v2870_v21 }
 0x53c   : > { %v1760_v43 = vmax.f32 %v1758_v38, 0.0 }
 0x53e   : > { %v1773_v46 = vrot.slane %v1760_v43, 7 }
 0x541   : > { %v2509_v37 = vpop.f32.mrf.mxu0 }
 0x542   : > { %v1753_v39 = vadd.f32 %v2509_v37, %v2354_v2 }
 0x543   : > { %v1748_v40 = vpop.f32.mrf.mxu0 }
 0x544   : > { %v1757_v42 = vmax.f32 %v1753_v39, 0.0 }
 0x546   : > { %v1759_v44 = vadd.f32 %v1757_v42, %v2888_v41 }
 0x548   : > { %v1761_v45 = vmax.f32 %v1759_v44, 0.0 }
 0x54a   : > { %v1774_v47 = vrot.slane %v1761_v45, 6 }
 0x54c   : > { %v1776_v48 = vsel %vm1775_vm11, %v1774_v47, %v1773_v46 }
 0x54d   : > { %2515 = vmatmul.mubr.msk.f32.vlgmr.msra.gmra.mxu1 %vm1123_vm6, %v1776_v48 }
 0x60b   : > { %1852 = sbr.rel (%p2361_p4) target bundleno = 1554 (0x612), region = 108 }
 0x60d   : > { %v1845_v50 = vpop.f32.mrf.mxu1 }
 0x60e   : > { %v1846_v21 = vadd.f32 %v2359_v49, %v1845_v50 }
 0x60f   : > { %v2516_v51 = vpop.f32.mrf.mxu1 }
 0x610   : > { %vm1853_vm12 = vcmask 254976   ;;  %v2585_v41 = vmov 0.0  }
 0x611   : > { %1854 = vst.msk [vmem:[#allocation2] sm:$0x3] %vm1853_vm12, %v2585_v41 }
 0x612 PF: > { %2517 = vmatprep.subr.mxu0 %v2579_v1  ;;  %v1859_v52 = vld [vmem:[%s2723_s23 + $0x18] sm:$0xff]  ;;  %v1858_v53 = vld [vmem:[%s2723_s23 + $0x10] sm:$0xff]  ;;  %2525 = vmatprep.mubr.msk.f32.mxu0 %vm2584_vm10, %v2579_v1  ;;  %v1857_v54 = vld [vmem:[%s2723_s23 + $0x8] sm:$0xff]  ;;  %vm1934_vm13 = vcmask 254976   ;;  %p2363_p5 = scmp.ne.s32.totalorder %s2707_s27, 2 }
 0x613   : > { %2518 = vmatpush3.msra.mxu0 %v1859_v52  ;;  %v1856_v55 = vld [vmem:[%s2723_s23] sm:$0xff] }
 0x614   : > { %2519 = vmatprep.subr.mxu0 %v2579_v1 }
 0x615   : > { %2520 = vmatpush3.msra.mxu0 %v1858_v53 }
 0x616   : > { %2521 = vmatprep.subr.mxu0 %v2579_v1 }
 0x617   : > { %2522 = vmatpush3.msra.mxu0 %v1857_v54 }
 0x618   : > { %2523 = vmatprep.subr.mxu0 %v2579_v1  ;;  %v1855_v56 = vld [vmem:[#allocation2] sm:$0x3] }
 0x619   : > { %2524 = vmatpush3.msra.mxu0 %v1856_v55 }
 0x61a   : > { %2526 = vmatmul.mubr.msk.f32.vlgmr.msra.gmra.mxu0 %vm1130_vm7, %v1846_v21 }
 0x6d9   : > { %1939 = sbr.rel (%p2363_p5) target bundleno = 2470 (0x9a6), region = 112 }
 0x6da   : > { %v1929_v57 = vpop.f32.mrf.mxu0 }
 0x6db   : > { %v1933_v58 = vadd.f32 %v1929_v57, %v1855_v56 }
 0x6dc   : > { %v2527_v59 = vpop.f32.mrf.mxu0 }
 0x6dd   : > { %1935 = vst.msk [vmem:[#allocation2] sm:$0x3] %vm1934_vm13, %v1933_v58 }
 0x6de   : > { %v1953_v60 = vld [vmem:[%s3067_s15 + $0x18] sm:$0xff]  ;;  %v2586_v61 = vmov 0.0   ;;  %v1952_v1 = vld [vmem:[%s3067_s15 + $0x10] sm:$0xff]  ;;  %vm2587_vm14 = vmmov 0   ;;  %v2364_v26 = vld [vmem:[%s3066_s14] ss:$0 sm:$0xff] }
 0x6df   : > { %2528 = vmatprep.subr.mxu0 %v2586_v61  ;;  %2536 = vmatprep.mubr.msk.f32.mxu0 %vm2587_vm14, %v2586_v61  ;;  %v1951_v0 = vld [vmem:[%s3067_s15 + $0x8] sm:$0xff]  ;;  %v1950_v4 = vld [vmem:[%s3067_s15] sm:$0xff]  ;;  %v2068_v18 = vld [vmem:[%s3071_s19 + $0x18] sm:$0xff]  ;;  %vm2149_vm15 = vcmask 1024  }
 0x6e0   : > { %2529 = vmatpush3.msra.mxu0 %v1953_v60  ;;  %2539 = vmatprep.subr.mxu1 %v2586_v61  ;;  %v2365_v6 = vld [vmem:[%s3068_s16] ss:$0 sm:$0xff]  ;;  %v2067_v19 = vld [vmem:[%s3071_s19 + $0x10] sm:$0xff]  ;;  %v2066_v20 = vld [vmem:[%s3071_s19 + $0x8] sm:$0xff] }
 0x6e1   : > { %2530 = vmatprep.subr.mxu0 %v2586_v61  ;;  %2547 = vmatprep.mubr.msk.f32.mxu1 %vm2587_vm14, %v2586_v61  ;;  %v2065_v22 = vld [vmem:[%s3071_s19] sm:$0xff] }
 0x6e2   : > { %2531 = vmatpush3.msra.mxu0 %v1952_v1  ;;  %2540 = vmatpush3.msra.mxu1 %v2068_v18  ;;  %v2367_v14 = vld [vmem:[%s3069_s17] ss:$0 sm:$0xff]  ;;  %v2369_v31 = vld [vmem:[#allocation3] ss:$0 sm:$0xff] }
 0x6e3   : > { %2532 = vmatprep.subr.mxu0 %v2586_v61  ;;  %2541 = vmatprep.subr.mxu1 %v2586_v61  ;;  %v2368_v15 = vld [vmem:[%s3070_s18] ss:$0 sm:$0xff] }
 0x6e4   : > { %v1940_v62 = vld [vmem:[#allocation2] sm:$0x3]  ;;  %2533 = vmatpush3.msra.mxu0 %v1951_v0  ;;  %2542 = vmatpush3.msra.mxu1 %v2067_v19 }
 0x6e5   : > { %v1948_v63 = vadd.f32 %v2364_v26, %v1940_v62  ;;  %2534 = vmatprep.subr.mxu0 %v2586_v61  ;;  %2543 = vmatprep.subr.mxu1 %v2586_v61 }
 0x6e6   : > { %2535 = vmatpush3.msra.mxu0 %v1950_v4  ;;  %2544 = vmatpush3.msra.mxu1 %v2066_v20 }
 0x6e7   : > { %v1949_v5 = vmax.f32 %v1948_v63, 0.0  ;;  %2545 = vmatprep.subr.mxu1 %v2586_v61 }
 0x6e8   : > { %2546 = vmatpush3.msra.mxu1 %v2065_v22 }
 0x6e9   : > { %2537 = vmatmul.mubr.msk.f32.vlgmr.msra.gmra.mxu0 %vm1130_vm7, %v1949_v5 }
 0x7a9   : > { %v2030_v7 = vpop.f32.mrf.mxu0 }
 0x7aa   : > { %v2031_v8 = vadd.f32 %v2365_v6, %v2030_v7 }
 0x7ab   : > { %v2538_v9 = vpop.f32.mrf.mxu0 }
 0x7ac   : > { %v2034_v10 = vsel %vm1934_vm13, %v2031_v8, 0.0 }
 0x7ad   : > { %2035 = vadd.xlane.f32.xlu0 %v2034_v10 }
 0x836   : > { %v2036_v11 = vpop.xlane.xlu0 %2035 }
 0x837   : > { %v2038_v12 = vmul.f32 0.03125, %v2036_v11 }
 0x839   : > { %v2039_v13 = vsub.f32 %v2031_v8, %v2038_v12 }
 0x83b   : > { %v2040_v16 = vmul.f32 %v2039_v13, %v2039_v13 }
 0x83d   : > { %v2041_v17 = vsel %vm1934_vm13, %v2040_v16, 0.0 }
 0x83e   : > { %2042 = vadd.xlane.f32.xlu0 %v2041_v17 }
 0x8c7   : > { %v2043_v23 = vpop.xlane.xlu0 %2042 }
 0x8c8   : > { %v2044_v24 = vmul.f32 0.03125, %v2043_v23 }
 0x8ca   : > { %v2045_v3 = vadd.f32 1e-05, %v2044_v24 }
 0x8cc   : > { %2569 = vrsqrt.f32 %v2045_v3 }
 0x8d9   : > { %v2570_v25 = vpop.eup %2569 }
 0x8da   : > { %v2047_v27 = vmul.f32 %v2570_v25, %v2039_v13 }
 0x8dc   : > { %v2055_v28 = vmul.f32 %v2367_v14, %v2047_v27 }
 0x8de   : > { %v2063_v29 = vadd.f32 %v2368_v15, %v2055_v28 }
 0x8e0   : > { %v2064_v30 = vmax.f32 %v2063_v29, 0.0 }
 0x8e2   : > { %2548 = vmatmul.mubr.msk.f32.vlgmr.msra.gmra.mxu1 %vm1130_vm7, %v2064_v30 }
 0x9a2   : > { %v2145_v32 = vpop.f32.mrf.mxu1 }
 0x9a3   : > { %v2146_v33 = vadd.f32 %v2369_v31, %v2145_v32 }
 0x9a4   : > { %v2549_v2 = vpop.f32.mrf.mxu1 }
 0x9a5   : > { %2150 = vst.msk [vmem:[%s3073_s21] sm:$0x3] %vm2149_vm15, %v2146_v33 }
 0x9a6 PF: > { %s33_s26 = sadd.s32 1, %s2577_s26  }
 0x9a7   : > { %p30_p6 = scmp.ge.s32.totalorder %s33_s26, 5  }
 0x9a9   :  { %32 = sbr.rel (!%p30_p6) target bundleno = 7 (0x7), region = 177 }

</bundles_post_ra>
